<compile_context>
chip_gen: v6e
topology: v6e:2x2x1
jax: 0.10.0
libtpu: 0.0.40
codegen_flags: <defaults>
</compile_context>

<pallas_src>
import functools

import jax
import jax.numpy as jnp
from jax.experimental import pallas as pl
from jax.experimental.pallas import tpu as pltpu


def _round_up(x, m):
    return ((x + m - 1) // m) * m


# ----------------------------------------------------------------------------
# Pallas kernel: 9 shifted matmuls (local accumulation) + BN shift + ReLU
# ----------------------------------------------------------------------------
def _fused_conv_kernel(x_ref, w_ref, shift_ref, o_ref, *, tap_offsets, mv):
    # x_ref:     (1, R, Cin_pad)   flat rows (r = h*W_pad + w) of one image.
    # w_ref:     (9, Cin_pad, tn)  BN-folded weights, tap-major (ky*3 + kx).
    # shift_ref: (1, tn)           folded conv-bias + BN shift (f32).
    # o_ref:     (1, Mv, tn)       output rows 0..Mv-1 (invalid w-border rows
    #                              are discarded by the wrapper).
    off0 = tap_offsets[0]
    acc = jnp.dot(x_ref[0, off0:off0 + mv, :], w_ref[0],
                  preferred_element_type=jnp.float32)
    for t in range(1, 9):
        off = tap_offsets[t]
        acc = acc + jnp.dot(x_ref[0, off:off + mv, :], w_ref[t],
                            preferred_element_type=jnp.float32)
    o_ref[0, :, :] = jnp.maximum(acc + shift_ref[...], 0.0).astype(o_ref.dtype)


# ----------------------------------------------------------------------------
# Weight folding / packing (done once per mode and cached on the module)
# ----------------------------------------------------------------------------
def pack_branch_pair(params_cls, params_loc, *, eps=1e-5,
                     compute_dtype=jnp.bfloat16):
    """Fold eval-mode BN (+ conv bias) of both branches into one fused,
    lane-padded weight tensor (9, Cin_pad, C_pad) and shift (1, C_pad)."""
    cin = params_cls["w"].shape[1]
    assert params_loc["w"].shape[1] == cin

    def fold(p):
        scale = p["gamma"] * jax.lax.rsqrt(p["var"] + eps)
        shift = p["beta"] + (p["b"] - p["mean"]) * scale
        cout = p["w"].shape[0]
        # (Cout,Cin,3,3) -> (ky,kx,Cin,Cout) -> (9,Cin,Cout), tap = ky*3+kx
        wk = jnp.transpose(p["w"], (2, 3, 1, 0)).reshape(9, cin, cout)
        return wk * scale[None, None, :], shift

    wk_cls, sh_cls = fold(params_cls)
    wk_loc, sh_loc = fold(params_loc)
    c_cls, c_loc = wk_cls.shape[-1], wk_loc.shape[-1]
    c_tot = c_cls + c_loc
    c_pad = _round_up(c_tot, 128)        # lane-dense output stores
    cin_pad = _round_up(cin, 8)          # sublane-aligned contraction dim

    wk = jnp.concatenate([wk_cls, wk_loc], axis=-1)
    wk = jnp.pad(wk, ((0, 0), (0, cin_pad - cin), (0, c_pad - c_tot)))
    shift = jnp.concatenate([sh_cls, sh_loc])
    shift = jnp.pad(shift, (0, c_pad - c_tot)).reshape(1, c_pad).astype(jnp.float32)
    return dict(wk=wk.astype(compute_dtype), shift=shift,
                cin=cin, cin_pad=cin_pad,
                c_cls=c_cls, c_loc=c_loc, c_pad=c_pad,
                compute_dtype=compute_dtype)


# ----------------------------------------------------------------------------
# Wrapper: fused (cls, loc) 3x3 VALID conv -> eval-mode BN -> ReLU
# ----------------------------------------------------------------------------
def fused_conv3x3_bn_relu(x_nchw, packed):
    """Runs both branch heads on the same features in one Pallas kernel.
    Returns (cls, loc) feature maps in NCHW (matching the PyTorch module)."""
    N, Cin, H, W = x_nchw.shape
    assert H >= 3 and W >= 3, "3x3 VALID conv needs H, W >= 3"
    assert Cin == packed["cin"]
    out_dtype = x_nchw.dtype
    cdtype = packed["compute_dtype"]
    cin_pad, c_pad = packed["cin_pad"], packed["c_pad"]
    c_cls, c_loc = packed["c_cls"], packed["c_loc"]

    # NCHW -> NHWC; pad W to a multiple of 8 (ky*W_pad taps sublane-aligned),
    # add one extra row of H (zeros) so every tap window stays in bounds, pad
    # Cin with zero channels.  One jnp.pad, no garbage reads anywhere.
    W_pad = _round_up(W, 8)
    x_nhwc = jnp.transpose(x_nchw, (0, 2, 3, 1))
    x_pad = jnp.pad(x_nhwc, ((0, 0), (0, 1), (0, W_pad - W), (0, cin_pad - Cin)))
    R = (H + 1) * W_pad
    x_rows = x_pad.reshape(N, R, cin_pad).astype(cdtype)

    # Output anchor rows 0..Mv-1 cover every valid (h <= H-3) position; the
    # invalid w >= W-2 columns are computed on zero-padding and sliced away.
    Mv = (H - 2) * W_pad
    tap_offsets = tuple(ky * W_pad + kx for ky in range(3) for kx in range(3))
    assert Mv - 1 + tap_offsets[-1] < R   # all tap slices strictly in bounds

    # Cout tile: widest multiple of 128 dividing c_pad; shrink when needed so
    # the grid has >= 2 blocks (keeps both v7x TensorCores busy for N == 1).
    tn = next(c for c in (512, 384, 256, 128) if c_pad % c == 0)
    if N * (c_pad // tn) < 2:
        for cand in (256, 128):
            if cand < tn and c_pad % cand == 0 and c_pad // cand >= 2:
                tn = cand
                break
    ncb = c_pad // tn

    kernel = functools.partial(_fused_conv_kernel, tap_offsets=tap_offsets, mv=Mv)

    cost = pl.CostEstimate(
        flops=int(2 * N * Mv * 9 * cin_pad * c_pad),
        transcendentals=0,
        bytes_accessed=int(x_rows.size * x_rows.dtype.itemsize
                           + packed["wk"].size * packed["wk"].dtype.itemsize
                           + N * Mv * c_pad * jnp.dtype(out_dtype).itemsize))

    y = pl.pallas_call(
        kernel,
        out_shape=jax.ShapeDtypeStruct((N, Mv, c_pad), out_dtype),
        grid=(ncb, N),                      # Cout OUTER -> weights fetched once
        in_specs=[
            # per-image flat rows (re-streamed per Cout block; small)
            pl.BlockSpec((1, R, cin_pad), lambda j, i: (i, 0, 0)),
            # folded weights: block index constant across inner batch axis,
            # so each Cout slice is DMA'd from HBM exactly once
            pl.BlockSpec((9, cin_pad, tn), lambda j, i: (0, 0, j)),
            # folded shift
            pl.BlockSpec((1, tn), lambda j, i: (0, j)),
        ],
        out_specs=pl.BlockSpec((1, Mv, tn), lambda j, i: (i, 0, j)),
        compiler_params=pltpu.CompilerParams(
            dimension_semantics=("parallel", "parallel"),
            vmem_limit_bytes=48 * 1024 * 1024),   # safe under v7x's 64 MiB VMEM
        cost_estimate=cost,
    )(x_rows, packed["wk"], packed["shift"])

    # Drop invalid border columns and padded channels, split fused Cout back
    # into (cls, loc), return NCHW.
    y = y.reshape(N, H - 2, W_pad, c_pad)[:, :, :W - 2, :]
    cls = jnp.transpose(y[..., :c_cls], (0, 3, 1, 2))
    loc = jnp.transpose(y[..., c_cls:c_cls + c_loc], (0, 3, 1, 2))
    return cls, loc


# ----------------------------------------------------------------------------
# SotRPNHead: parameters + forward
# ----------------------------------------------------------------------------
def _make_branch_params(key, cin, cout, dtype=jnp.float32):
    """Conv2d(cin->cout, k=3) + BatchNorm2d(cout) params, PyTorch-style init."""
    w = jax.random.normal(key, (cout, cin, 3, 3), dtype) * 0.01  # normal_(std=0.01)
    b = jnp.zeros((cout,), dtype)                                # constant_(0)
    return dict(w=w, b=b,
                gamma=jnp.ones((cout,), dtype), beta=jnp.zeros((cout,), dtype),
                mean=jnp.zeros((cout,), dtype), var=jnp.ones((cout,), dtype))


class SotRPNHeadPallas:
    """Pallas re-implementation of SotRPNHead (cls / loc conv heads)."""

    def __init__(self, key, in_channels, num_cell_anchors, box_dim=4,
                 compute_dtype=jnp.bfloat16, eps=1e-5):
        k1, k2, k3, k4 = jax.random.split(key, 4)
        self.search_conv_cls = _make_branch_params(k1, in_channels, in_channels)
        self.search_conv_loc = _make_branch_params(k2, in_channels, in_channels)
        self.template_conv_cls = _make_branch_params(
            k3, in_channels, in_channels * num_cell_anchors)
        self.template_conv_loc = _make_branch_params(
            k4, in_channels, in_channels * box_dim * num_cell_anchors)
        self.compute_dtype = compute_dtype   # bf16 default (f32 accumulation)
        self.eps = eps
        self._packed_cache = {}              # folded weights cached across calls

    def _packed(self, t_s):
        key = (t_s, jnp.dtype(self.compute_dtype).name)
        if key not in self._packed_cache:
            if t_s == "template":
                p_cls, p_loc = self.template_conv_cls, self.template_conv_loc
            else:
                p_cls, p_loc = self.search_conv_cls, self.search_conv_loc
            self._packed_cache[key] = pack_branch_pair(
                p_cls, p_loc, eps=self.eps, compute_dtype=self.compute_dtype)
        return self._packed_cache[key]

    def __call__(self, features, t_s):
        if t_s not in ("template", "search"):
            raise ValueError("proper mode not provided...")
        return fused_conv3x3_bn_relu(features, self._packed(t_s))


# ----------------------------------------------------------------------------
# Reference (plain JAX) for correctness checking
# ----------------------------------------------------------------------------
def _ref_branch(params, x_nchw, eps=1e-5):
    y = jax.lax.conv_general_dilated(
        x_nchw, params["w"], window_strides=(1, 1), padding="VALID",
        dimension_numbers=("NCHW", "OIHW", "NCHW"))
    y = y + params["b"][None, :, None, None]
    scale = params["gamma"] / jnp.sqrt(params["var"] + eps)
    y = (y - params["mean"][None, :, None, None]) * scale[None, :, None, None] \
        + params["beta"][None, :, None, None]
    return jnp.maximum(y, 0.0)


if __name__ == "__main__":
    key = jax.random.PRNGKey(0)
    k_param, k_data = jax.random.split(key)

    N, C, H, W = 2, 4, 16, 16          # small NCHW features
    num_cell_anchors = 3               # e.g. 3 anchor sizes x 1 aspect ratio
    box_dim = 4

    head = SotRPNHeadPallas(k_param, C, num_cell_anchors, box_dim)  # bf16 compute
    features = jax.random.normal(k_data, (N, C, H, W), jnp.float32)

    # template branch (one fused Pallas call for cls+loc)
    t_cls, t_loc = head(features, "template")
    t_cls, t_loc = jax.block_until_ready(t_cls), jax.block_until_ready(t_loc)
    assert t_cls.shape == (N, C * num_cell_anchors, H - 2, W - 2)
    assert t_loc.shape == (N, C * box_dim * num_cell_anchors, H - 2, W - 2)

    # search branch
    s_cls, s_loc = head(features, "search")
    s_cls, s_loc = jax.block_until_ready(s_cls), jax.block_until_ready(s_loc)
    assert s_cls.shape == (N, C, H - 2, W - 2)
    assert s_loc.shape == (N, C, H - 2, W - 2)

    # correctness vs. plain-JAX (f32) reference
    ref_t_cls = _ref_branch(head.template_conv_cls, features)
    ref_t_loc = _ref_branch(head.template_conv_loc, features)
    ref_s_cls = _ref_branch(head.search_conv_cls, features)
    ref_s_loc = _ref_branch(head.search_conv_loc, features)

    # bf16 compute path: deliberately loosened tolerance (BN scale folded into
    # weights before the bf16 cast).
    for got, ref in [(t_cls, ref_t_cls), (t_loc, ref_t_loc),
                     (s_cls, ref_s_cls), (s_loc, ref_s_loc)]:
        assert jnp.allclose(got, ref, atol=2e-2, rtol=2e-2), \
            float(jnp.max(jnp.abs(got - ref)))

    # f32 compute path: tight tolerance.
    head.compute_dtype = jnp.float32
    for mode, refs in [("template", (ref_t_cls, ref_t_loc)),
                       ("search", (ref_s_cls, ref_s_loc))]:
        got_cls, got_loc = head(features, mode)
        got_cls = jax.block_until_ready(got_cls)
        got_loc = jax.block_until_ready(got_loc)
        for got, ref in zip((got_cls, got_loc), refs):
            assert jnp.allclose(got, ref, atol=1e-4, rtol=1e-4), \
                float(jnp.max(jnp.abs(got - ref)))

    print("KERNEL_OK")
</pallas_src>

<mosaic_0001>
module attributes {stable_mosaic.version = 11 : i64} {
  func.func @_fused_conv_kernel(%arg0: i32, %arg1: i32, %arg2: memref<1x272x8xbf16, #tpu.memory_space<vmem>>, %arg3: memref<9x8x128xbf16, #tpu.memory_space<vmem>>, %arg4: memref<1x128xf32, #tpu.memory_space<vmem>>, %arg5: memref<1x224x128xf32, #tpu.memory_space<vmem>>) attributes {dimension_semantics = [#tpu.dimension_semantics<parallel>, #tpu.dimension_semantics<parallel>], iteration_bounds = array<i64: 1, 2>, scalar_prefetch = 0 : i64, scratch_operands = 0 : i64, tpu.core_type = #tpu.core_type<tc>, window_params = [{transform_indices = @transform_0, window_bounds = array<i64: 1, 272, 8>}, {transform_indices = @transform_1, window_bounds = array<i64: 9, 8, 128>}, {transform_indices = @transform_2, window_bounds = array<i64: 1, 128>}, {transform_indices = @transform_3, window_bounds = array<i64: 1, 224, 128>}]} {
    %c0 = arith.constant 0 : index
    %c0_0 = arith.constant 0 : index
    %c0_1 = arith.constant 0 : index
    %0 = vector.load %arg2[%c0, %c0_0, %c0_1] : memref<1x272x8xbf16, #tpu.memory_space<vmem>>, vector<1x224x8xbf16>
    %1 = vector.shape_cast %0 : vector<1x224x8xbf16> to vector<224x8xbf16>
    %c0_2 = arith.constant 0 : index
    %c0_3 = arith.constant 0 : index
    %c0_4 = arith.constant 0 : index
    %2 = vector.load %arg3[%c0_2, %c0_3, %c0_4] : memref<9x8x128xbf16, #tpu.memory_space<vmem>>, vector<1x8x128xbf16>
    %3 = vector.shape_cast %2 : vector<1x8x128xbf16> to vector<8x128xbf16>
    %cst = arith.constant dense<0.000000e+00> : vector<224x128xf32>
    %4 = tpu.matmul %1, %3, %cst {dimension_numbers = #tpu.dot_dimension_numbers<[1], [0], [0], [1], [0, 0, 1, 1], [], []>} : vector<224x8xbf16>, vector<8x128xbf16>, vector<224x128xf32> -> vector<224x128xf32>
    %c0_5 = arith.constant 0 : index
    %c1 = arith.constant 1 : index
    %c0_6 = arith.constant 0 : index
    %5 = vector.load %arg2[%c0_5, %c1, %c0_6] : memref<1x272x8xbf16, #tpu.memory_space<vmem>>, vector<1x224x8xbf16>
    %6 = vector.shape_cast %5 : vector<1x224x8xbf16> to vector<224x8xbf16>
    %c1_7 = arith.constant 1 : index
    %c0_8 = arith.constant 0 : index
    %c0_9 = arith.constant 0 : index
    %7 = vector.load %arg3[%c1_7, %c0_8, %c0_9] : memref<9x8x128xbf16, #tpu.memory_space<vmem>>, vector<1x8x128xbf16>
    %8 = vector.shape_cast %7 : vector<1x8x128xbf16> to vector<8x128xbf16>
    %cst_10 = arith.constant dense<0.000000e+00> : vector<224x128xf32>
    %9 = tpu.matmul %6, %8, %cst_10 {dimension_numbers = #tpu.dot_dimension_numbers<[1], [0], [0], [1], [0, 0, 1, 1], [], []>} : vector<224x8xbf16>, vector<8x128xbf16>, vector<224x128xf32> -> vector<224x128xf32>
    %10 = arith.addf %4, %9 : vector<224x128xf32>
    %c0_11 = arith.constant 0 : index
    %c2 = arith.constant 2 : index
    %c0_12 = arith.constant 0 : index
    %11 = vector.load %arg2[%c0_11, %c2, %c0_12] : memref<1x272x8xbf16, #tpu.memory_space<vmem>>, vector<1x224x8xbf16>
    %12 = vector.shape_cast %11 : vector<1x224x8xbf16> to vector<224x8xbf16>
    %c2_13 = arith.constant 2 : index
    %c0_14 = arith.constant 0 : index
    %c0_15 = arith.constant 0 : index
    %13 = vector.load %arg3[%c2_13, %c0_14, %c0_15] : memref<9x8x128xbf16, #tpu.memory_space<vmem>>, vector<1x8x128xbf16>
    %14 = vector.shape_cast %13 : vector<1x8x128xbf16> to vector<8x128xbf16>
    %cst_16 = arith.constant dense<0.000000e+00> : vector<224x128xf32>
    %15 = tpu.matmul %12, %14, %cst_16 {dimension_numbers = #tpu.dot_dimension_numbers<[1], [0], [0], [1], [0, 0, 1, 1], [], []>} : vector<224x8xbf16>, vector<8x128xbf16>, vector<224x128xf32> -> vector<224x128xf32>
    %16 = arith.addf %10, %15 : vector<224x128xf32>
    %c0_17 = arith.constant 0 : index
    %c16 = arith.constant 16 : index
    %c0_18 = arith.constant 0 : index
    %17 = vector.load %arg2[%c0_17, %c16, %c0_18] : memref<1x272x8xbf16, #tpu.memory_space<vmem>>, vector<1x224x8xbf16>
    %18 = vector.shape_cast %17 : vector<1x224x8xbf16> to vector<224x8xbf16>
    %c3 = arith.constant 3 : index
    %c0_19 = arith.constant 0 : index
    %c0_20 = arith.constant 0 : index
    %19 = vector.load %arg3[%c3, %c0_19, %c0_20] : memref<9x8x128xbf16, #tpu.memory_space<vmem>>, vector<1x8x128xbf16>
    %20 = vector.shape_cast %19 : vector<1x8x128xbf16> to vector<8x128xbf16>
    %cst_21 = arith.constant dense<0.000000e+00> : vector<224x128xf32>
    %21 = tpu.matmul %18, %20, %cst_21 {dimension_numbers = #tpu.dot_dimension_numbers<[1], [0], [0], [1], [0, 0, 1, 1], [], []>} : vector<224x8xbf16>, vector<8x128xbf16>, vector<224x128xf32> -> vector<224x128xf32>
    %22 = arith.addf %16, %21 : vector<224x128xf32>
    %c0_22 = arith.constant 0 : index
    %c17 = arith.constant 17 : index
    %c0_23 = arith.constant 0 : index
    %23 = vector.load %arg2[%c0_22, %c17, %c0_23] : memref<1x272x8xbf16, #tpu.memory_space<vmem>>, vector<1x224x8xbf16>
    %24 = vector.shape_cast %23 : vector<1x224x8xbf16> to vector<224x8xbf16>
    %c4 = arith.constant 4 : index
    %c0_24 = arith.constant 0 : index
    %c0_25 = arith.constant 0 : index
    %25 = vector.load %arg3[%c4, %c0_24, %c0_25] : memref<9x8x128xbf16, #tpu.memory_space<vmem>>, vector<1x8x128xbf16>
    %26 = vector.shape_cast %25 : vector<1x8x128xbf16> to vector<8x128xbf16>
    %cst_26 = arith.constant dense<0.000000e+00> : vector<224x128xf32>
    %27 = tpu.matmul %24, %26, %cst_26 {dimension_numbers = #tpu.dot_dimension_numbers<[1], [0], [0], [1], [0, 0, 1, 1], [], []>} : vector<224x8xbf16>, vector<8x128xbf16>, vector<224x128xf32> -> vector<224x128xf32>
    %28 = arith.addf %22, %27 : vector<224x128xf32>
    %c0_27 = arith.constant 0 : index
    %c18 = arith.constant 18 : index
    %c0_28 = arith.constant 0 : index
    %29 = vector.load %arg2[%c0_27, %c18, %c0_28] : memref<1x272x8xbf16, #tpu.memory_space<vmem>>, vector<1x224x8xbf16>
    %30 = vector.shape_cast %29 : vector<1x224x8xbf16> to vector<224x8xbf16>
    %c5 = arith.constant 5 : index
    %c0_29 = arith.constant 0 : index
    %c0_30 = arith.constant 0 : index
    %31 = vector.load %arg3[%c5, %c0_29, %c0_30] : memref<9x8x128xbf16, #tpu.memory_space<vmem>>, vector<1x8x128xbf16>
    %32 = vector.shape_cast %31 : vector<1x8x128xbf16> to vector<8x128xbf16>
    %cst_31 = arith.constant dense<0.000000e+00> : vector<224x128xf32>
    %33 = tpu.matmul %30, %32, %cst_31 {dimension_numbers = #tpu.dot_dimension_numbers<[1], [0], [0], [1], [0, 0, 1, 1], [], []>} : vector<224x8xbf16>, vector<8x128xbf16>, vector<224x128xf32> -> vector<224x128xf32>
    %34 = arith.addf %28, %33 : vector<224x128xf32>
    %c0_32 = arith.constant 0 : index
    %c32 = arith.constant 32 : index
    %c0_33 = arith.constant 0 : index
    %35 = vector.load %arg2[%c0_32, %c32, %c0_33] : memref<1x272x8xbf16, #tpu.memory_space<vmem>>, vector<1x224x8xbf16>
    %36 = vector.shape_cast %35 : vector<1x224x8xbf16> to vector<224x8xbf16>
    %c6 = arith.constant 6 : index
    %c0_34 = arith.constant 0 : index
    %c0_35 = arith.constant 0 : index
    %37 = vector.load %arg3[%c6, %c0_34, %c0_35] : memref<9x8x128xbf16, #tpu.memory_space<vmem>>, vector<1x8x128xbf16>
    %38 = vector.shape_cast %37 : vector<1x8x128xbf16> to vector<8x128xbf16>
    %cst_36 = arith.constant dense<0.000000e+00> : vector<224x128xf32>
    %39 = tpu.matmul %36, %38, %cst_36 {dimension_numbers = #tpu.dot_dimension_numbers<[1], [0], [0], [1], [0, 0, 1, 1], [], []>} : vector<224x8xbf16>, vector<8x128xbf16>, vector<224x128xf32> -> vector<224x128xf32>
    %40 = arith.addf %34, %39 : vector<224x128xf32>
    %c0_37 = arith.constant 0 : index
    %c33 = arith.constant 33 : index
    %c0_38 = arith.constant 0 : index
    %41 = vector.load %arg2[%c0_37, %c33, %c0_38] : memref<1x272x8xbf16, #tpu.memory_space<vmem>>, vector<1x224x8xbf16>
    %42 = vector.shape_cast %41 : vector<1x224x8xbf16> to vector<224x8xbf16>
    %c7 = arith.constant 7 : index
    %c0_39 = arith.constant 0 : index
    %c0_40 = arith.constant 0 : index
    %43 = vector.load %arg3[%c7, %c0_39, %c0_40] : memref<9x8x128xbf16, #tpu.memory_space<vmem>>, vector<1x8x128xbf16>
    %44 = vector.shape_cast %43 : vector<1x8x128xbf16> to vector<8x128xbf16>
    %cst_41 = arith.constant dense<0.000000e+00> : vector<224x128xf32>
    %45 = tpu.matmul %42, %44, %cst_41 {dimension_numbers = #tpu.dot_dimension_numbers<[1], [0], [0], [1], [0, 0, 1, 1], [], []>} : vector<224x8xbf16>, vector<8x128xbf16>, vector<224x128xf32> -> vector<224x128xf32>
    %46 = arith.addf %40, %45 : vector<224x128xf32>
    %c0_42 = arith.constant 0 : index
    %c34 = arith.constant 34 : index
    %c0_43 = arith.constant 0 : index
    %47 = vector.load %arg2[%c0_42, %c34, %c0_43] : memref<1x272x8xbf16, #tpu.memory_space<vmem>>, vector<1x224x8xbf16>
    %48 = vector.shape_cast %47 : vector<1x224x8xbf16> to vector<224x8xbf16>
    %c8 = arith.constant 8 : index
    %c0_44 = arith.constant 0 : index
    %c0_45 = arith.constant 0 : index
    %49 = vector.load %arg3[%c8, %c0_44, %c0_45] : memref<9x8x128xbf16, #tpu.memory_space<vmem>>, vector<1x8x128xbf16>
    %50 = vector.shape_cast %49 : vector<1x8x128xbf16> to vector<8x128xbf16>
    %cst_46 = arith.constant dense<0.000000e+00> : vector<224x128xf32>
    %51 = tpu.matmul %48, %50, %cst_46 {dimension_numbers = #tpu.dot_dimension_numbers<[1], [0], [0], [1], [0, 0, 1, 1], [], []>} : vector<224x8xbf16>, vector<8x128xbf16>, vector<224x128xf32> -> vector<224x128xf32>
    %52 = arith.addf %46, %51 : vector<224x128xf32>
    %c0_47 = arith.constant 0 : index
    %c0_48 = arith.constant 0 : index
    %53 = vector.load %arg4[%c0_47, %c0_48] : memref<1x128xf32, #tpu.memory_space<vmem>>, vector<1x128xf32>
    %54 = vector.broadcast %53 : vector<1x128xf32> to vector<224x128xf32>
    %55 = arith.addf %52, %54 : vector<224x128xf32>
    %cst_49 = arith.constant 0.000000e+00 : f32
    %56 = vector.broadcast %cst_49 : f32 to vector<224x128xf32>
    %57 = arith.maximumf %55, %56 : vector<224x128xf32>
    %c0_50 = arith.constant 0 : index
    %c0_51 = arith.constant 0 : index
    %c0_52 = arith.constant 0 : index
    %58 = vector.load %arg5[%c0_50, %c0_51, %c0_52] : memref<1x224x128xf32, #tpu.memory_space<vmem>>, vector<1x224x128xf32>
    %59 = vector.shape_cast %58 : vector<1x224x128xf32> to vector<224x128xf32>
    %60 = vector.shape_cast %57 : vector<224x128xf32> to vector<1x224x128xf32>
    tpu.vector_store %arg5[%c0_50, %c0_51, %c0_52], %60 {strides = array<i32>} : memref<1x224x128xf32, #tpu.memory_space<vmem>>, vector<1x224x128xf32>,
    return
  }
  func.func @transform_0(%arg0: i32, %arg1: i32) -> (i32, i32, i32) {
    %c0_i32 = arith.constant 0 : i32
    %c0_i32_0 = arith.constant 0 : i32
    %c0_i32_1 = arith.constant 0 : i32
    return %arg1, %c0_i32, %c0_i32_0 : i32, i32, i32
  }
  func.func @transform_1(%arg0: i32, %arg1: i32) -> (i32, i32, i32) {
    %c0_i32 = arith.constant 0 : i32
    %c0_i32_0 = arith.constant 0 : i32
    %c0_i32_1 = arith.constant 0 : i32
    return %c0_i32, %c0_i32_0, %arg0 : i32, i32, i32
  }
  func.func @transform_2(%arg0: i32, %arg1: i32) -> (i32, i32) {
    %c0_i32 = arith.constant 0 : i32
    %c0_i32_0 = arith.constant 0 : i32
    return %c0_i32, %arg0 : i32, i32
  }
  func.func @transform_3(%arg0: i32, %arg1: i32) -> (i32, i32, i32) {
    %c0_i32 = arith.constant 0 : i32
    %c0_i32_0 = arith.constant 0 : i32
    return %arg1, %c0_i32, %arg0 : i32, i32, i32
  }
}

</mosaic_0001>

<bundles_post_ra>
// kernel: tpu_custom_call.1
= control target key start
LH: loop header
LB: loop body
LE: loop exit
PB: predicated region body
PF: predicated region fallthrough
CT: control target
= control target key end

     0   :  { %8 = vsyncpa [#allocation3], 0  ;;  %s5337_s0 = inlined_call_operand.vmem [shape: bf16[2,272,8], index: 0, kind: input, shape index: {}]   ;;  %s5338_s1 = inlined_call_operand.vmem [shape: bf16[9,8,128], index: 1, kind: input, shape index: {}]   ;;  %s5339_s2 = inlined_call_operand.vmem [shape: f32[1,128], index: 2, kind: input, shape index: {}]   ;;  %s5340_s3 = inlined_call_operand.hbm [shape: f32[2,224,128], index: 3, kind: output, shape index: {}]  }
   0x1   :  { %10 = vsyncpa [#allocation3 + $0x1], 0  ;;  %s4158_s12 = smov 0   ;;  %s4160_s13 = smov 0  }
   0x2   :  { %s4162_s14 = smov 0   ;;  %s4164_s15 = smov 0  }
   0x3   :  { %s4166_s16 = smov 0   ;;  %s4168_s17 = smov 0  }
   0x4 LB: > { %s3282_s18 = sadd.s32 4294967295, %s4133_s17   ;;  %s3283_s19 = sadd.s32 4294967294, %s4133_s17   ;;  %s4133_s17 = sphi %s4168_s17, %s16_s17   ;;  %s4129_s16 = sphi %s4166_s16, %s5411_s16   ;;  %s4125_s15 = sphi %s4164_s15, %s5410_s15   ;;  %s4121_s14 = sphi %s4162_s14, %s5409_s14   ;;  %s4117_s13 = sphi %s4160_s13, %s5408_s13   ;;  %s4113_s12 = sphi %s4158_s12, %s5407_s12  }
   0x5   : > { %s25_s20 = sadd.s32 1, %s4129_s16  ;;  %s115_s21 = sadd.s32 1, %s4121_s14 }
   0x6   : > { %p26_p0 = scmp.ge.s32.totalorder %s25_s20, 2  ;;  %p125_p1 = scmp.ne.s32.totalorder %s4121_s14, %s4117_s13 }
   0x7   : > { %p126_p2 = scmp.eq.s32.totalorder %s3282_s18, 1  ;;  %p131_p3 = scmp.ne.s32.totalorder %s4117_s13, %s4113_s12 }
   0x8   : > { %s5413_s20 = smov (%p26_p0, %s25_s20), 0  ;;  %p132_p5 = scmp.eq.s32.totalorder %s3283_s19, 1 }
   0x9   : > { %p4198_p4 = por %p126_p2, %p125_p1  ;;  %s110_s23 = ssub.s32 %s4129_s16, %s5413_s20 }
   0xa   : > { %p3288_p6 = scmp.ge.s32.totalorder %s4133_s17, 1  ;;  %p113_p7 = scmp.eq.s32.totalorder %s110_s23, 0 }
   0xb   : > { %p4205_p8 = por %p132_p5, %p131_p3  ;;  %p171_p9 = scmp.lt.s32.totalorder %s4133_s17, 3 }
   0xc   : > { %s4211_s25 = scalar_select %p113_p7, %s4121_s14, %s115_s21  }
   0xd   : > { %p172_p10 = pnand %p3288_p6, %p171_p9 }
   0xf   : > { %175 = sbr.rel (%p172_p10) target bundleno = 505 (0x1f9), region = 32 }
  0x14   : > { %v3290_v0 = vld [vmem:[%s5338_s1 + $0x4] sm:$0xf]  ;;  %vm480_vm0 = vcmask 1043456   ;;  %p202_p11 = scmp.lt.s32.totalorder %s4125_s15, 1  ;;  %v3334_v2 = vld [vmem:[%s5338_s1 + $0x8] sm:$0xf] }
  0x15   : > { %3911 = vmatprep.subr.msk.bf16.mxu0 %vm480_vm0, %v3290_v0  ;;  %3912 = vmatprep.subr.msk.bf16.mxu1 %vm480_vm0, %v3290_v0  ;;  %v482_v1 = vsel %vm480_vm0, %v3290_v0, 0  ;;  %v243_v3 = vld [vmem:[%s5338_s1] sm:$0xf]  ;;  %vm320_vm1 = vsmask.f32 7424  ;;  %vm437_vm2 = vcmask 64512  }
  0x16   : > { %3640 = vmatpush3.bf16.msra.mxu0 %v482_v1  ;;  %3910 = vmatpush3.bf16.msra.mxu1 %v482_v1  ;;  %s203_s5 = scalar_select %p202_p11, %s4125_s15, 1  ;;  %v884_v8 = vsel %vm480_vm0, %v3334_v2, 0  ;;  %v658_v16 = vsel %vm480_vm0, %v243_v3, 0  ;;  %v4277_v33 = vld [vmem:[%s5338_s1 + $0x10] sm:$0xf]  ;;  %vm811_vm3 = vcmask 1046528  }
  0x17   : > { %3914 = vmatprep.subr.msk.bf16.mxu0 %vm480_vm0, %v3334_v2  ;;  %3913 = vmatprep.subr.msk.bf16.mxu1 %vm480_vm0, %v243_v3  ;;  %v4297_v45 = vld [vmem:[%s5338_s1 + $0xc] sm:$0xf]  ;;  %s3923_s10 = smul.u32 3584, %s4125_s15  ;;  %s4135_s26 = smov [#allocation2]  }
  0x18   : > { %s3922_s6 = smul.u32 136, %s203_s5  ;;  %s199_s5 = sand.u32 1, %s4117_s13  }
  0x19   : > { %s5287_s21 = scalar_lea.hbm %s5340_s3, %s3923_s10  ;;  %s5292_s15 = scalar_lea.sflag [#allocation3], %s199_s5 }
  0x1a   : > { %s4232_s9 = scalar_lea.vmem %s5337_s0, %s3922_s6  ;;  %s3921_s6 = smul.u32 224, %s199_s5 }
  0x1b   : > { %v215_v4 = vld [vmem:[%s4232_s9] sm:$0xf]  ;;  %v4236_v5 = vld [vmem:[%s4232_s9 + $0x4] sm:$0xf]  ;;  %v4242_v7 = vld [vmem:[%s4232_s9 + $0x8] sm:$0xff]   ;;  %s4061_s27 = sshll.u32 %s4135_s26, 4  ;;  %s4062_s27 = int_to_ptr.vmem [resolvable:$false] %s4061_s27 }
  0x1c   : > { %v4239_v6 = vcombine.low %v215_v4, %v4236_v5  ;;  %v329_v11 = vshll.u32 %v4242_v7, 16  ;;  %v333_v12 = vshrl.u32 %v4242_v7, 16  ;;  %v4250_v13 = vld [vmem:[%s4232_s9 + $0x40] sm:$0xff]   ;;  %v4253_v14 = vld [vmem:[%s4232_s9 + $0x48] sm:$0xff]   ;;  %v4256_v15 = vld [vmem:[%s4232_s9 + $0x10] sm:$0xff]   ;;  %s4063_s28 = scalar_lea.vmem %s4062_s27, 7168 }
  0x1d   : > { %v385_v19 = vshll.u32 %v4250_v13, 16  ;;  %v389_v20 = vshrl.u32 %v4250_v13, 16  ;;  %v393_v21 = vshll.u32 %v4253_v14, 16  ;;  %v397_v22 = vshrl.u32 %v4253_v14, 16  ;;  %v4265_v24 = vld [vmem:[%s4232_s9 + $0x50] sm:$0xff]   ;;  %v4270_v28 = vld [vmem:[%s4232_s9 + $0x18] sm:$0xff]  }
  0x1e   : > { %v322_v9 = vshrl.u32 %v4239_v6, 16  ;;  %v324_v10 = vshll.u32 %v4239_v6, 16  ;;  %v331_v18 = vrot.slane %v329_v11, 1  ;;  %v337_v23 = vshll.u32 %v4256_v15, 16  ;;  %v4283_v37 = vld [vmem:[%s4232_s9 + $0x58] sm:$0xff]   ;;  %v4287_v39 = vld [vmem:[%s4232_s9 + $0x20] sm:$0xff]  }
  0x1f   : > { %v4267_v27 = vrot.slane %v385_v19, 1  ;;  %v395_v29 = vrot.slane %v393_v21, 1  ;;  %v401_v31 = vshll.u32 %v4265_v24, 16  ;;  %v341_v32 = vshrl.u32 %v4256_v15, 16  ;;  %v4292_v44 = vld [vmem:[%s4232_s9 + $0x60] sm:$0xff]   ;;  %v4304_v50 = vld [vmem:[%s4232_s9 + $0x28] sm:$0xff]  }
  0x20   : > { %v326_v17 = vrot.slane %v324_v10, 1  ;;  %v335_v26 = vor.u32 %v333_v12, %v331_v18  ;;  %v339_v30 = vrot.slane %v337_v23, 1  ;;  %v345_v36 = vshll.u32 %v4270_v28, 16  ;;  %v4319_v62 = vld [vmem:[%s4232_s9 + $0x68] sm:$0xff]   ;;  %v4329_v10 = vld [vmem:[%s4232_s9 + $0x30] sm:$0xff]   ;;  %v4332_v11 = vld [vmem:[%s4232_s9 + $0x38] sm:$0xff]  }
  0x21   : > { %v391_v35 = vor.u32 %v389_v20, %v4267_v27  ;;  %v405_v38 = vshrl.u32 %v4265_v24, 16  ;;  %v399_v40 = vor.u32 %v397_v22, %v395_v29  ;;  %v403_v42 = vrot.slane %v401_v31, 1 }
  0x22   : > { %v327_v25 = vor.u32 %v326_v17, %v322_v9  ;;  %v340_v41 = vsel %vm320_vm1, %v335_v26, %v339_v30  ;;  %v343_v43 = vor.u32 %v341_v32, %v339_v30  ;;  %v347_v47 = vrot.slane %v345_v36, 1  ;;  %v4336_v17 = vld [vmem:[%s4232_s9 + $0x70] ss:$0 sps:$4 sm:$0x11]  }
  0x23   : > { %v396_v46 = vsel %vm320_vm1, %v391_v35, %v395_v29  ;;  %v409_v48 = vshll.u32 %v4283_v37, 16  ;;  %v349_v49 = vshrl.u32 %v4270_v28, 16  ;;  %v404_v51 = vsel %vm320_vm1, %v399_v40, %v403_v42 }
  0x24   : > { %v332_v34 = vsel %vm320_vm1, %v327_v25, %v331_v18  ;;  %3657 = vmatprep.mubr.msk.bf16.mxu1 %vm437_vm2, %v396_v46  ;;  %v407_v52 = vor.u32 %v405_v38, %v403_v42  ;;  %v353_v53 = vshll.u32 %v4287_v39, 16  ;;  %v413_v54 = vshrl.u32 %v4283_v37, 16 }
  0x25   : > { %3641 = vmatprep.mubr.msk.bf16.mxu0 %vm437_vm2, %v332_v34  ;;  %3658 = vmatmul.mubr.msk.bf16.vlgmr.msra.gmra.mxu1 %vm437_vm2, %v404_v51  ;;  %v348_v55 = vsel %vm320_vm1, %v343_v43, %v347_v47  ;;  %v411_v56 = vrot.slane %v409_v48, 1  ;;  %v351_v57 = vor.u32 %v349_v49, %v347_v47  ;;  %v417_v58 = vshll.u32 %v4292_v44, 16  ;;  %v805_v34 = vld [vmem:[%s4232_s9] sm:$0xe] }
  0x26   : > { %3642 = vmatmul.mubr.msk.bf16.vlgmr.msra.gmra.mxu0 %vm437_vm2, %v340_v41  ;;  %3670 = vmatpush3.bf16.msra.mxu1 %v658_v16  ;;  %v355_v59 = vrot.slane %v353_v53, 1  ;;  %v357_v60 = vshrl.u32 %v4287_v39, 16  ;;  %v361_v61 = vshll.u32 %v4304_v50, 16  ;;  %v421_v2 = vshrl.u32 %v4292_v44, 16 }
  0x27   : > { %3700 = vmatpush3.bf16.msra.mxu0 %v884_v8  ;;  %3645 = vmatprep.mubr.msk.bf16.mxu0 %vm437_vm2, %v348_v55  ;;  %v412_v63 = vsel %vm320_vm1, %v407_v52, %v411_v56  ;;  %v415_v0 = vor.u32 %v413_v54, %v411_v56  ;;  %v419_v1 = vrot.slane %v417_v58, 1  ;;  %v425_v9 = vshll.u32 %v4319_v62, 16  ;;  %v4372_v54 = vld [vmem:[%s5338_s1 + $0x14] sm:$0xf] }
  0x28   : > { %3916 = vmatprep.subr.msk.bf16.mxu0 %vm480_vm0, %v4277_v33  ;;  %3915 = vmatprep.subr.msk.bf16.mxu1 %vm480_vm0, %v4297_v45  ;;  %v356_v3 = vsel %vm320_vm1, %v351_v57, %v355_v59  ;;  %v359_v4 = vor.u32 %v357_v60, %v355_v59  ;;  %v363_v8 = vrot.slane %v361_v61, 1  ;;  %v365_v16 = vshrl.u32 %v4304_v50, 16 }
  0x29   : > { %3661 = vmatprep.mubr.msk.bf16.mxu1 %vm437_vm2, %v412_v63  ;;  %v423_v12 = vor.u32 %v421_v2, %v419_v1  ;;  %v429_v18 = vshrl.u32 %v4319_v62, 16  ;;  %v420_v19 = vsel %vm320_vm1, %v415_v0, %v419_v1  ;;  %v427_v21 = vrot.slane %v425_v9, 1  ;;  %v1377_v1 = vld [vmem:[%s4232_s9 + $0x8] sm:$0xf] }
  0x2a   : > { %v364_v20 = vsel %vm320_vm1, %v359_v4, %v363_v8  ;;  %v369_v22 = vshll.u32 %v4329_v10, 16  ;;  %v433_v23 = vshll.u32 %v4336_v17, 16  ;;  %v373_v25 = vshrl.u32 %v4329_v10, 16 }
  0x2b   : > { %v377_v26 = vshll.u32 %v4332_v11, 16  ;;  %v428_v29 = vsel %vm320_vm1, %v423_v12, %v427_v21  ;;  %v367_v30 = vor.u32 %v365_v16, %v363_v8  ;;  %v431_v35 = vor.u32 %v429_v18, %v427_v21  ;;  %v4455_v21 = vld [vmem:[%s4232_s9 + $0x18] sm:$0xff]  }
  0x2c   : > { %v371_v31 = vrot.slane %v369_v22, 1  ;;  %v435_v36 = vrot.slane %v433_v23, 1  ;;  %v381_v41 = vshrl.u32 %v4332_v11, 16  ;;  %v3335_v43 = vcombine.low %v805_v34, %v4236_v5  ;;  %v4462_v23 = vld [vmem:[%s4232_s9 + $0x20] sm:$0xff]  }
  0x2d   : > { %3662 = vmatmul.mubr.msk.bf16.gmra.mxu1 %vm437_vm2, %v420_v19  ;;  %v379_v32 = vrot.slane %v377_v26, 1  ;;  %v813_v49 = vrot.slane %v4242_v7, 1  ;;  %v1202_v52 = vsel %vm480_vm0, %v4297_v45, 0  ;;  %v815_v53 = vrot.slane %v4256_v15, 1 }
  0x2e   : > { %3646 = vmatmul.mubr.msk.bf16.gmra.mxu0 %vm437_vm2, %v356_v3  ;;  %3665 = vmatprep.mubr.msk.bf16.mxu1 %vm437_vm2, %v428_v29  ;;  %v375_v38 = vor.u32 %v373_v25, %v371_v31  ;;  %v372_v40 = vsel %vm320_vm1, %v367_v30, %v371_v31  ;;  %v436_v46 = vsel %vm320_vm1, %v431_v35, %v435_v36  ;;  %v812_v48 = vrot.slane %v3335_v43, 1  ;;  %v4431_v3 = vld [vmem:[%s4232_s9 + $0xc] sm:$0xf]  ;;  %v3998_v30 = vld [vmem:[%s4232_s9 + $0x10] sm:$0xff]  }
  0x2f   : > { %3649 = vmatprep.mubr.msk.bf16.mxu0 %vm437_vm2, %v364_v20  ;;  %v383_v47 = vor.u32 %v381_v41, %v379_v32  ;;  %v1640_v45 = vsel %vm480_vm0, %v4277_v33, 0  ;;  %v821_v56 = vrot.slane %v4304_v50, 1  ;;  %v823_v58 = vrot.slane %v4329_v10, 1  ;;  %v3997_v20 = vld [vmem:[%s4232_s9 + $0x8] sm:$0xff]   ;;  %v4487_v43 = vld [vmem:[%s4232_s9 + $0x30] sm:$0xff]  }
  0x30   : > { %v380_v42 = vsel %vm320_vm1, %v375_v38, %v379_v32  ;;  %v814_v5 = vsel %vm811_vm3, %v812_v48, %v813_v49  ;;  %v827_v60 = vrot.slane %v4250_v13, 1  ;;  %v831_v0 = vrot.slane %v4265_v24, 1  ;;  %v3999_v32 = vld [vmem:[%s4232_s9 + $0x18] sm:$0xff]   ;;  %v4477_v36 = vld [vmem:[%s4232_s9 + $0x28] sm:$0xff]  }
  0x31   : > { %v388_v51 = vsel %vm320_vm1, %v383_v47, %v4267_v27  ;;  %v816_v27 = vsel %vm811_vm3, %v813_v49, %v815_v53  ;;  %v833_v2 = vrot.slane %v4283_v37, 1  ;;  %v3380_v4 = vcombine.low %v1377_v1, %v4431_v3  ;;  %v4002_v49 = vld [vmem:[%s4232_s9 + $0x20] sm:$0xff]  }
  0x32   : > { %v837_v9 = vrot.slane %v4319_v62, 1  ;;  %v1497_v25 = vshll.u32 %v4455_v21, 16  ;;  %v1501_v31 = vshrl.u32 %v4455_v21, 16  ;;  %v1893_v34 = vsel %vm480_vm0, %v4372_v54, 0 }
  0x33   : > { %v834_v8 = vsel %vm811_vm3, %v831_v0, %v833_v2  ;;  %v1482_v12 = vshrl.u32 %v3380_v4, 16  ;;  %v1509_v48 = vshrl.u32 %v4462_v23, 16 }
  0x34   : > { %v1499_v35 = vrot.slane %v1497_v25, 1 }
  0x35   : > { %3666 = vmatmul.mubr.msk.bf16.gmra.mxu1 %vm437_vm2, %v436_v46  ;;  %v1513_v46 = vshll.u32 %v4477_v36, 16 }
  0x36   : > { %3650 = vmatmul.mubr.msk.bf16.gmra.mxu0 %vm437_vm2, %v372_v40  ;;  %3671 = vmatprep.mubr.msk.bf16.mxu1 %vm437_vm2, %v4239_v6  ;;  %v817_v6 = vrot.slane %v4270_v28, 1  ;;  %v4483_v40 = vld [vmem:[%s5338_s1 + $0x1c] sm:$0xf]  ;;  %v1503_v41 = vor.u32 %v1501_v31, %v1499_v35 }
  0x37   : > { %3653 = vmatprep.mubr.msk.bf16.mxu0 %vm437_vm2, %v380_v42 }
  0x38   : > { %v818_v55 = vsel %vm811_vm3, %v815_v53, %v817_v6  ;;  %v1521_v53 = vshll.u32 %v4487_v43, 16 }
  0x3d   : > { %3672 = vmatmul.mubr.msk.bf16.vlgmr.msra.gmra.mxu1 %vm437_vm2, %v4242_v7  ;;  %v4389_v7 = vld [vmem:[%s5338_s1 + $0x18] sm:$0xf] }
  0x3e   : > { %3654 = vmatmul.mubr.msk.bf16.gmra.mxu0 %vm437_vm2, %v388_v51  ;;  %3730 = vmatpush3.bf16.msra.mxu1 %v1202_v52  ;;  %v2211_v51 = vsel %vm480_vm0, %v4389_v7, 0  ;;  %v1517_v52 = vshrl.u32 %v4477_v36, 16 }
  0x3f   : > { %3701 = vmatprep.mubr.msk.bf16.mxu0 %vm437_vm2, %v814_v5  ;;  %3675 = vmatprep.mubr.msk.bf16.mxu1 %vm437_vm2, %v4256_v15  ;;  %v819_v15 = vrot.slane %v4287_v39, 1 }
  0x40   : > { %3917 = vmatprep.subr.msk.bf16.mxu1 %vm480_vm0, %v4372_v54  ;;  %v4004_v54 = vld [vmem:[%s4232_s9 + $0x28] sm:$0xff]  }
  0x41   : > { %v820_v33 = vsel %vm811_vm3, %v817_v6, %v819_v15  ;;  %v822_v57 = vsel %vm811_vm3, %v819_v15, %v821_v56  ;;  %v4505_v6 = vld [vmem:[%s5338_s1 + $0x20] sm:$0xf]  ;;  %v1523_v15 = vrot.slane %v1521_v53, 1 }
  0x45   : > { %3676 = vmatmul.mubr.msk.bf16.gmra.mxu1 %vm437_vm2, %v4270_v28  ;;  %v825_v28 = vrot.slane %v4332_v11, 1 }
  0x46   : > { %3702 = vmatmul.mubr.msk.bf16.vlgmr.msra.gmra.mxu0 %vm437_vm2, %v816_v27  ;;  %3679 = vmatprep.mubr.msk.bf16.mxu1 %vm437_vm2, %v4287_v39  ;;  %v824_v39 = vsel %vm811_vm3, %v821_v56, %v823_v58  ;;  %v1515_v27 = vrot.slane %v1513_v46, 1  ;;  %v4514_v56 = vld [vmem:[%s4232_s9 + $0x40] sm:$0xff]   ;;  %v4570_v46 = vld [vmem:[%s4232_s9 + $0x70] sm:$0xff]  }
  0x47   : > { %3760 = vmatpush3.bf16.msra.mxu0 %v1640_v45  ;;  %3705 = vmatprep.mubr.msk.bf16.mxu0 %vm437_vm2, %v818_v55  ;;  %v826_v59 = vsel %vm811_vm3, %v823_v58, %v825_v28  ;;  %v828_v61 = vsel %vm811_vm3, %v825_v28, %v827_v60  ;;  %v4509_v45 = vld [vmem:[%s4232_s9 + $0x38] sm:$0xff]   ;;  %v1525_v58 = vshrl.u32 %v4487_v43, 16  ;;  %v4006_v28 = vld [vmem:[%s4232_s9 + $0x30] sm:$0xff]  }
  0x48   : > { %3918 = vmatprep.subr.msk.bf16.mxu0 %vm480_vm0, %v4389_v7  ;;  %v1519_v7 = vor.u32 %v1517_v52, %v1515_v27 }
  0x4d   : > { %3680 = vmatmul.mubr.msk.bf16.gmra.mxu1 %vm437_vm2, %v4304_v50  ;;  %v829_v50 = vrot.slane %v4253_v14, 1 }
  0x4e   : > { %3706 = vmatmul.mubr.msk.bf16.gmra.mxu0 %vm437_vm2, %v820_v33  ;;  %3683 = vmatprep.mubr.msk.bf16.mxu1 %vm437_vm2, %v4329_v10  ;;  %v4443_v10 = vld [vmem:[%s4232_s9 + $0x10] sm:$0xff]   ;;  %v1529_v33 = vshll.u32 %v4509_v45, 16 }
  0x4f   : > { %3709 = vmatprep.mubr.msk.bf16.mxu0 %vm437_vm2, %v822_v57  ;;  %v830_v63 = vsel %vm811_vm3, %v827_v60, %v829_v50  ;;  %v1489_v18 = vshll.u32 %v4443_v10, 16  ;;  %v1493_v29 = vshrl.u32 %v4443_v10, 16  ;;  %v1537_v60 = vshll.u32 %v4514_v56, 16 }
  0x51   : > { %v1491_v22 = vrot.slane %v1489_v18, 1 }
  0x53   : > { %v1495_v38 = vor.u32 %v1493_v29, %v1491_v22 }
  0x55   : > { %3684 = vmatmul.mubr.msk.bf16.gmra.mxu1 %vm437_vm2, %v4332_v11  ;;  %v1484_v11 = vshll.u32 %v3380_v4, 16  ;;  %v1500_v47 = vsel %vm320_vm1, %v1495_v38, %v1499_v35  ;;  %v4565_v35 = vld [vmem:[%s4232_s9 + $0x68] sm:$0xff]  }
  0x56   : > { %3710 = vmatmul.mubr.msk.bf16.gmra.mxu0 %vm437_vm2, %v824_v39  ;;  %3687 = vmatprep.mubr.msk.bf16.mxu1 %vm437_vm2, %v4250_v13  ;;  %v832_v13 = vsel %vm811_vm3, %v829_v50, %v831_v0  ;;  %v1524_v39 = vsel %vm320_vm1, %v1519_v7, %v1523_v15  ;;  %v4008_v50 = vld [vmem:[%s4232_s9 + $0x38] sm:$0xff]   ;;  %v1527_v0 = vor.u32 %v1525_v58, %v1523_v15  ;;  %v1581_v53 = vshrl.u32 %v4565_v35, 16 }
  0x57   : > { %3713 = vmatprep.mubr.msk.bf16.mxu0 %vm437_vm2, %v826_v59  ;;  %v1486_v16 = vrot.slane %v1484_v11, 1  ;;  %v1533_v59 = vshrl.u32 %v4509_v45, 16 }
  0x5d   : > { %3688 = vmatmul.mubr.msk.bf16.gmra.mxu1 %vm437_vm2, %v4253_v14  ;;  %v835_v14 = vrot.slane %v4292_v44, 1 }
  0x5e   : > { %3714 = vmatmul.mubr.msk.bf16.gmra.mxu0 %vm437_vm2, %v828_v61  ;;  %3691 = vmatprep.mubr.msk.bf16.mxu1 %vm437_vm2, %v4265_v24  ;;  %v1531_v61 = vrot.slane %v1529_v33, 1  ;;  %v4586_v33 = vld [vmem:[%s4232_s9 + $0x78] ss:$0 sps:$4 sm:$0x11]  }
  0x5f   : > { %3717 = vmatprep.mubr.msk.bf16.mxu0 %vm437_vm2, %v830_v63  ;;  %v836_v24 = vsel %vm811_vm3, %v833_v2, %v835_v14  ;;  %v838_v19 = vsel %vm811_vm3, %v835_v14, %v837_v9  ;;  %v4529_v63 = vld [vmem:[%s4232_s9 + $0x48] sm:$0xff]   ;;  %v1539_v2 = vrot.slane %v1537_v60, 1  ;;  %v1541_v14 = vshrl.u32 %v4514_v56, 16 }
  0x60   : > { %v1535_v1 = vor.u32 %v1533_v59, %v1531_v61  ;;  %v1545_v4 = vshll.u32 %v4529_v63, 16  ;;  %v1589_v60 = vshrl.u32 %v4570_v46, 16 }
  0x62   : > { %v1540_v11 = vsel %vm320_vm1, %v1535_v1, %v1539_v2  ;;  %v1547_v18 = vrot.slane %v1545_v4, 1  ;;  %v1826_v4 = vrot.slane %v4462_v23, 1 }
  0x65   : > { %3692 = vmatmul.mubr.msk.bf16.gmra.mxu1 %vm437_vm2, %v4283_v37  ;;  %v839_v37 = vrot.slane %v4336_v17, 1 }
  0x66   : > { %3718 = vmatmul.mubr.msk.bf16.gmra.mxu0 %vm437_vm2, %v832_v13  ;;  %3695 = vmatprep.mubr.msk.bf16.mxu1 %vm437_vm2, %v4292_v44  ;;  %v1487_v44 = vor.u32 %v1486_v16, %v1482_v12  ;;  %v4534_v13 = vld [vmem:[%s4232_s9 + $0x50] sm:$0xff]   ;;  %v4012_v16 = vld [vmem:[%s4232_s9 + $0x48] sm:$0xff]  }
  0x67   : > { %3721 = vmatprep.mubr.msk.bf16.mxu0 %vm437_vm2, %v834_v8  ;;  %v840_v26 = vsel %vm811_vm3, %v837_v9, %v839_v37  ;;  %v1532_v8 = vsel %vm320_vm1, %v1527_v0, %v1531_v61  ;;  %v4010_v9 = vld [vmem:[%s4232_s9 + $0x40] sm:$0xff]   ;;  %v1553_v12 = vshll.u32 %v4534_v13, 16  ;;  %v1557_v29 = vshrl.u32 %v4534_v13, 16 }
  0x68   : > { %v1492_v17 = vsel %vm320_vm1, %v1487_v44, %v1491_v22  ;;  %v4552_v22 = vld [vmem:[%s4232_s9 + $0x60] sm:$0xff]  }
  0x69   : > { %v1555_v44 = vrot.slane %v1553_v12, 1  ;;  %v1830_v12 = vrot.slane %v4487_v43, 1  ;;  %v4030_v43 = vld [vmem:[%s4232_s9 + $0x28] sm:$0xff]  }
  0x6b   : > { %v1559_v38 = vor.u32 %v1557_v29, %v1555_v44  ;;  %v4033_v29 = vld [vmem:[%s4232_s9 + $0x40] sm:$0xff]  }
  0x6d   : > { %3696 = vmatmul.mubr.msk.bf16.gmra.mxu1 %vm437_vm2, %v4319_v62  ;;  %v1505_v62 = vshll.u32 %v4462_v23, 16  ;;  %v4028_v23 = vld [vmem:[%s4232_s9 + $0x18] sm:$0xff]  }
  0x6e   : > { %3722 = vmatmul.mubr.msk.bf16.gmra.mxu0 %vm437_vm2, %v836_v24  ;;  %3731 = vmatprep.mubr.msk.bf16.mxu1 %vm437_vm2, %v3997_v20  ;;  %v1549_v24 = vshrl.u32 %v4529_v63, 16  ;;  %v1543_v20 = vor.u32 %v1541_v14, %v1539_v2  ;;  %v4027_v14 = vld [vmem:[%s4232_s9 + $0x10] sm:$0xff]  }
  0x6f   : > { %3725 = vmatprep.mubr.msk.bf16.mxu0 %vm437_vm2, %v838_v19  ;;  %v1507_v42 = vrot.slane %v1505_v62, 1  ;;  %v4547_v19 = vld [vmem:[%s4232_s9 + $0x58] sm:$0xff]   ;;  %v1569_v62 = vshll.u32 %v4552_v22, 16 }
  0x70   : > { %v1551_v37 = vor.u32 %v1549_v24, %v1547_v18  ;;  %v1561_v25 = vshll.u32 %v4547_v19, 16  ;;  %v1565_v31 = vshrl.u32 %v4547_v19, 16 }
  0x71   : > { %v1508_v5 = vsel %vm320_vm1, %v1503_v41, %v1507_v42  ;;  %v1511_v55 = vor.u32 %v1509_v48, %v1507_v42  ;;  %v1571_v42 = vrot.slane %v1569_v62, 1  ;;  %v4035_v62 = vld [vmem:[%s4232_s9 + $0x50] sm:$0xff]  }
  0x73   : > { %v1516_v57 = vsel %vm320_vm1, %v1511_v55, %v1515_v27  ;;  %v4020_v27 = vld [vmem:[%s4232_s9 + $0x68] sm:$0xff]  }
  0x75   : > { %3732 = vmatmul.mubr.msk.bf16.vlgmr.msra.gmra.mxu1 %vm437_vm2, %v3998_v30  ;;  %v4014_v30 = vld [vmem:[%s4232_s9 + $0x50] sm:$0xff]  }
  0x76   : > { %3726 = vmatmul.mubr.msk.bf16.gmra.mxu0 %vm437_vm2, %v840_v26  ;;  %3790 = vmatpush3.bf16.msra.mxu1 %v1893_v34  ;;  %v1548_v26 = vsel %vm320_vm1, %v1543_v20, %v1547_v18  ;;  %v1563_v34 = vrot.slane %v1561_v25, 1 }
  0x77   : > { %3761 = vmatprep.mubr.msk.bf16.mxu0 %vm437_vm2, %v1492_v17  ;;  %3735 = vmatprep.mubr.msk.bf16.mxu1 %vm437_vm2, %v3999_v32  ;;  %v1556_v17 = vsel %vm320_vm1, %v1551_v37, %v1555_v44  ;;  %v4016_v32 = vld [vmem:[%s4232_s9 + $0x58] sm:$0xff]   ;;  %v4031_v37 = vld [vmem:[%s4232_s9 + $0x30] sm:$0xff]  }
  0x78   : > { %3919 = vmatprep.subr.msk.bf16.mxu1 %vm480_vm0, %v4483_v40  ;;  %v1567_v41 = vor.u32 %v1565_v31, %v1563_v34  ;;  %v1564_v48 = vsel %vm320_vm1, %v1559_v38, %v1563_v34  ;;  %v1840_v31 = vrot.slane %v4547_v19, 1  ;;  %v2387_v34 = vld [vmem:[%s4232_s9 + $0x14] sm:$0xf]  ;;  %v1844_v19 = vrot.slane %v4565_v35, 1 }
  0x7a   : > { %v1572_v52 = vsel %vm320_vm1, %v1567_v41, %v1571_v42 }
  0x7d   : > { %3736 = vmatmul.mubr.msk.bf16.gmra.mxu1 %vm437_vm2, %v4002_v49  ;;  %v1573_v49 = vshrl.u32 %v4552_v22, 16 }
  0x7e   : > { %3762 = vmatmul.mubr.msk.bf16.vlgmr.msra.gmra.mxu0 %vm437_vm2, %v1500_v47  ;;  %3739 = vmatprep.mubr.msk.bf16.mxu1 %vm437_vm2, %v4004_v54  ;;  %v1577_v47 = vshll.u32 %v4565_v35, 16  ;;  %v1585_v54 = vshll.u32 %v4570_v46, 16 }
  0x7f   : > { %3820 = vmatpush3.bf16.msra.mxu0 %v2211_v51  ;;  %3765 = vmatprep.mubr.msk.bf16.mxu0 %vm437_vm2, %v1508_v5  ;;  %v1815_v51 = vld [vmem:[%s4232_s9 + $0x8] sm:$0xe]  ;;  %v4018_v5 = vld [vmem:[%s4232_s9 + $0x60] sm:$0xff]   ;;  %v1575_v15 = vor.u32 %v1573_v49, %v1571_v42 }
  0x80   : > { %3920 = vmatprep.subr.msk.bf16.mxu0 %vm480_vm0, %v4505_v6  ;;  %v1579_v55 = vrot.slane %v1577_v47, 1  ;;  %v3410_v7 = vcombine.low %v1815_v51, %v4431_v3  ;;  %v1587_v58 = vrot.slane %v1585_v54, 1  ;;  %v1593_v3 = vshll.u32 %v4586_v33, 16  ;;  %v4037_v51 = vld [vmem:[%s4232_s9 + $0x60] sm:$0xff]  }
  0x81   : > { %v1846_v47 = vrot.slane %v4570_v46, 1  ;;  %v4043_v46 = vld [vmem:[%s4232_s9 + $0x20] sm:$0xff]  }
  0x82   : > { %v1580_v59 = vsel %vm320_vm1, %v1575_v15, %v1579_v55  ;;  %v1591_v1 = vor.u32 %v1589_v60, %v1587_v58  ;;  %v1595_v2 = vrot.slane %v1593_v3, 1 }
  0x85   : > { %3740 = vmatmul.mubr.msk.bf16.gmra.mxu1 %vm437_vm2, %v4006_v28  ;;  %v1821_v28 = vrot.slane %v3410_v7, 1  ;;  %v4038_v7 = vld [vmem:[%s4232_s9 + $0x68] sm:$0xff]  }
  0x86   : > { %3766 = vmatmul.mubr.msk.bf16.gmra.mxu0 %vm437_vm2, %v1516_v57  ;;  %3743 = vmatprep.mubr.msk.bf16.mxu1 %vm437_vm2, %v4008_v50  ;;  %v1583_v57 = vor.u32 %v1581_v53, %v1579_v55  ;;  %v4022_v50 = vld [vmem:[%s4232_s9 + $0x70] sm:$0xff]  }
  0x87   : > { %3769 = vmatprep.mubr.msk.bf16.mxu0 %vm437_vm2, %v1524_v39  ;;  %v1822_v39 = vrot.slane %v4443_v10, 1  ;;  %v1824_v10 = vrot.slane %v4455_v21, 1  ;;  %v1828_v21 = vrot.slane %v4477_v36, 1  ;;  %v1832_v36 = vrot.slane %v4509_v45, 1  ;;  %v2824_v55 = vld [vmem:[%s4232_s9 + $0x10] sm:$0xe] }
  0x88   : > { %v1588_v61 = vsel %vm320_vm1, %v1583_v57, %v1587_v58  ;;  %v1836_v45 = vrot.slane %v4529_v63, 1  ;;  %v4034_v63 = vld [vmem:[%s4232_s9 + $0x48] sm:$0xff]  }
  0x89   : > { %v1823_v0 = vsel %vm811_vm3, %v1821_v28, %v1822_v39  ;;  %v1827_v24 = vsel %vm811_vm3, %v1824_v10, %v1826_v4  ;;  %v1829_v18 = vsel %vm811_vm3, %v1826_v4, %v1828_v21  ;;  %v1831_v20 = vsel %vm811_vm3, %v1828_v21, %v1830_v12  ;;  %v4676_v58 = vld [vmem:[%s4232_s9 + $0x28] sm:$0xff]   ;;  %v4039_v28 = vld [vmem:[%s4232_s9 + $0x70] sm:$0xff]  }
  0x8a   : > { %v1833_v44 = vsel %vm811_vm3, %v1830_v12, %v1832_v36  ;;  %v2518_v12 = vshrl.u32 %v4676_v58, 16 }
  0x8d   : > { %3744 = vmatmul.mubr.msk.bf16.gmra.mxu1 %vm437_vm2, %v4010_v9  ;;  %v1825_v9 = vsel %vm811_vm3, %v1822_v39, %v1824_v10  ;;  %v2506_v39 = vshll.u32 %v4043_v46, 16  ;;  %v4688_v10 = vld [vmem:[%s4232_s9 + $0x30] sm:$0xff]  }
  0x8e   : > { %3770 = vmatmul.mubr.msk.bf16.gmra.mxu0 %vm437_vm2, %v1532_v8  ;;  %3747 = vmatprep.mubr.msk.bf16.mxu1 %vm437_vm2, %v4012_v16  ;;  %v1596_v8 = vsel %vm320_vm1, %v1591_v1, %v1595_v2  ;;  %v4029_v16 = vld [vmem:[%s4232_s9 + $0x20] sm:$0xff]   ;;  %v2522_v21 = vshll.u32 %v4688_v10, 16 }
  0x8f   : > { %3773 = vmatprep.mubr.msk.bf16.mxu0 %vm437_vm2, %v1540_v11  ;;  %v2649_v11 = vsel %vm480_vm0, %v4483_v40, 0  ;;  %v2902_v40 = vsel %vm480_vm0, %v4505_v6, 0  ;;  %v1834_v6 = vrot.slane %v4514_v56, 1  ;;  %v4032_v56 = vld [vmem:[%s4232_s9 + $0x38] sm:$0xff]  }
  0x91   : > { %v1835_v25 = vsel %vm811_vm3, %v1832_v36, %v1834_v6  ;;  %v2833_v36 = vrot.slane %v4043_v46, 1 }
  0x95   : > { %3748 = vmatmul.mubr.msk.bf16.gmra.mxu1 %vm437_vm2, %v4014_v30  ;;  %v1837_v30 = vsel %vm811_vm3, %v1834_v6, %v1836_v45 }
  0x96   : > { %3774 = vmatmul.mubr.msk.bf16.gmra.mxu0 %vm437_vm2, %v1548_v26  ;;  %3751 = vmatprep.mubr.msk.bf16.mxu1 %vm437_vm2, %v4016_v32  ;;  %v1838_v26 = vrot.slane %v4534_v13, 1  ;;  %v1842_v13 = vrot.slane %v4552_v22, 1  ;;  %v2386_v32 = vld [vmem:[%s4232_s9 + $0x10] sm:$0xf]  ;;  %v4036_v22 = vld [vmem:[%s4232_s9 + $0x58] sm:$0xff]  }
  0x97   : > { %3777 = vmatprep.mubr.msk.bf16.mxu0 %vm437_vm2, %v1556_v17  ;;  %v3455_v42 = vcombine.low %v2386_v32, %v2387_v34 }
  0x98   : > { %v1839_v17 = vsel %vm811_vm3, %v1836_v45, %v1838_v26  ;;  %v1841_v38 = vsel %vm811_vm3, %v1838_v26, %v1840_v31  ;;  %v1843_v41 = vsel %vm811_vm3, %v1840_v31, %v1842_v13 }
  0x99   : > { %v2493_v49 = vshll.u32 %v3455_v42, 16  ;;  %v2491_v53 = vshrl.u32 %v3455_v42, 16 }
  0x9b   : > { %v2495_v54 = vrot.slane %v2493_v49, 1 }
  0x9d   : > { %3752 = vmatmul.mubr.msk.bf16.gmra.mxu1 %vm437_vm2, %v4018_v5  ;;  %v1845_v5 = vsel %vm811_vm3, %v1842_v13, %v1844_v19  ;;  %v2496_v15 = vor.u32 %v2495_v54, %v2491_v53  ;;  %v4749_v53 = vld [vmem:[%s4232_s9 + $0x50] sm:$0xff]  }
  0x9e   : > { %3778 = vmatmul.mubr.msk.bf16.gmra.mxu0 %vm437_vm2, %v1564_v48  ;;  %3755 = vmatprep.mubr.msk.bf16.mxu1 %vm437_vm2, %v4020_v27  ;;  %v4661_v48 = vld [vmem:[%s4232_s9 + $0x18] sm:$0xff]   ;;  %v1848_v27 = vrot.slane %v4586_v33, 1 }
  0x9f   : > { %3781 = vmatprep.mubr.msk.bf16.mxu0 %vm437_vm2, %v1572_v52  ;;  %v1847_v52 = vsel %vm811_vm3, %v1844_v19, %v1846_v47  ;;  %v2498_v35 = vshll.u32 %v4661_v48, 16  ;;  %v2502_v3 = vshrl.u32 %v4661_v48, 16  ;;  %v2831_v2 = vrot.slane %v4661_v48, 1 }
  0xa0   : > { %v1849_v60 = vsel %vm811_vm3, %v1846_v47, %v1848_v27  ;;  %v2837_v48 = vrot.slane %v4688_v10, 1 }
  0xa1   : > { %v2500_v57 = vrot.slane %v2498_v35, 1  ;;  %v2834_v31 = vsel %vm811_vm3, %v2831_v2, %v2833_v36 }
  0xa3   : > { %v2501_v33 = vsel %vm320_vm1, %v2496_v15, %v2500_v57  ;;  %v2504_v4 = vor.u32 %v2502_v3, %v2500_v57 }
  0xa5   : > { %3756 = vmatmul.mubr.msk.bf16.gmra.mxu1 %vm437_vm2, %v4022_v50  ;;  %v2510_v50 = vshrl.u32 %v4043_v46, 16 }
  0xa6   : > { %3782 = vmatmul.mubr.msk.bf16.gmra.mxu0 %vm437_vm2, %v1580_v59  ;;  %3791 = vmatprep.mubr.msk.bf16.mxu1 %vm437_vm2, %v1823_v0  ;;  %v3485_v59 = vcombine.low %v2824_v55, %v2387_v34  ;;  %v2508_v0 = vrot.slane %v2506_v39, 1  ;;  %v2554_v39 = vshll.u32 %v4749_v53, 16 }
  0xa7   : > { %3785 = vmatprep.mubr.msk.bf16.mxu0 %vm437_vm2, %v1588_v61  ;;  %v2514_v61 = vshll.u32 %v4676_v58, 16 }
  0xa8   : > { %v2830_v1 = vrot.slane %v3485_v59, 1 }
  0xad   : > { %3792 = vmatmul.mubr.msk.bf16.vlgmr.msra.gmra.mxu1 %vm437_vm2, %v1825_v9  ;;  %v2516_v9 = vrot.slane %v2514_v61, 1  ;;  %v2558_v61 = vshrl.u32 %v4749_v53, 16 }
  0xae   : > { %3786 = vmatmul.mubr.msk.bf16.gmra.mxu0 %vm437_vm2, %v1596_v8  ;;  %3850 = vmatpush3.bf16.msra.mxu1 %v2649_v11  ;;  %v4042_v8 = vld [vmem:[%s4232_s9 + $0x78] sm:$0xff]  }
  0xaf   : > { %3821 = vmatprep.mubr.msk.bf16.mxu0 %vm437_vm2, %v4027_v14  ;;  %3795 = vmatprep.mubr.msk.bf16.mxu1 %vm437_vm2, %v1827_v24  ;;  %v2512_v14 = vor.u32 %v2510_v50, %v2508_v0  ;;  %v4693_v11 = vld [vmem:[%s4232_s9 + $0x38] sm:$0xff]   ;;  %v2832_v24 = vsel %vm811_vm3, %v2830_v1, %v2831_v2  ;;  %v2520_v45 = vor.u32 %v2518_v12, %v2516_v9  ;;  %v4793_v12 = vld [vmem:[%s4232_s9 + $0x68] sm:$0xff]  }
  0xb5   : > { %3796 = vmatmul.mubr.msk.bf16.gmra.mxu1 %vm437_vm2, %v1829_v18  ;;  %v2526_v18 = vshrl.u32 %v4688_v10, 16 }
  0xb6   : > { %3822 = vmatmul.mubr.msk.bf16.vlgmr.msra.gmra.mxu0 %vm437_vm2, %v4028_v23  ;;  %3799 = vmatprep.mubr.msk.bf16.mxu1 %vm437_vm2, %v1831_v20  ;;  %v2509_v23 = vsel %vm320_vm1, %v2504_v4, %v2508_v0  ;;  %v2530_v20 = vshll.u32 %v4693_v11, 16  ;;  %v2556_v4 = vrot.slane %v2554_v39, 1  ;;  %v2582_v39 = vshrl.u32 %v4793_v12, 16 }
  0xb7   : > { %3880 = vmatpush3.bf16.msra.mxu0 %v2902_v40  ;;  %3825 = vmatprep.mubr.msk.bf16.mxu0 %vm437_vm2, %v4029_v16  ;;  %v2517_v40 = vsel %vm320_vm1, %v2512_v14, %v2516_v9  ;;  %v4785_v14 = vld [vmem:[%s4232_s9 + $0x60] sm:$0xff]  }
  0xbd   : > { %3800 = vmatmul.mubr.msk.bf16.gmra.mxu1 %vm437_vm2, %v1833_v44  ;;  %v2835_v44 = vrot.slane %v4676_v58, 1 }
  0xbe   : > { %3826 = vmatmul.mubr.msk.bf16.gmra.mxu0 %vm437_vm2, %v4030_v43  ;;  %3803 = vmatprep.mubr.msk.bf16.mxu1 %vm437_vm2, %v1835_v25  ;;  %v4713_v25 = vld [vmem:[%s4232_s9 + $0x40] sm:$0xff]  }
  0xbf   : > { %3829 = vmatprep.mubr.msk.bf16.mxu0 %vm437_vm2, %v4031_v37  ;;  %v2524_v37 = vrot.slane %v2522_v21, 1  ;;  %v2538_v32 = vshll.u32 %v4713_v25, 16  ;;  %v2838_v15 = vsel %vm811_vm3, %v2835_v44, %v2837_v48  ;;  %v2841_v1 = vrot.slane %v4713_v25, 1 }
  0xc0   : > { %v2560_v21 = vor.u32 %v2558_v61, %v2556_v4 }
  0xc1   : > { %v2525_v34 = vsel %vm320_vm1, %v2520_v45, %v2524_v37 }
  0xc5   : > { %3804 = vmatmul.mubr.msk.bf16.gmra.mxu1 %vm437_vm2, %v1837_v30  ;;  %v2532_v30 = vrot.slane %v2530_v20, 1 }
  0xc6   : > { %3830 = vmatmul.mubr.msk.bf16.gmra.mxu0 %vm437_vm2, %v4032_v56  ;;  %3807 = vmatprep.mubr.msk.bf16.mxu1 %vm437_vm2, %v1839_v17  ;;  %v4721_v17 = vld [vmem:[%s4232_s9 + $0x48] sm:$0xff]  }
  0xc7   : > { %3833 = vmatprep.mubr.msk.bf16.mxu0 %vm437_vm2, %v4033_v29  ;;  %v2528_v29 = vor.u32 %v2526_v18, %v2524_v37  ;;  %v2546_v47 = vshll.u32 %v4721_v17, 16  ;;  %v2570_v37 = vshll.u32 %v4785_v14, 16 }
  0xc9   : > { %v2533_v19 = vsel %vm320_vm1, %v2528_v29, %v2532_v30  ;;  %v2548_v55 = vrot.slane %v2546_v47, 1 }
  0xcd   : > { %3808 = vmatmul.mubr.msk.bf16.gmra.mxu1 %vm437_vm2, %v1841_v38  ;;  %v2534_v38 = vshrl.u32 %v4693_v11, 16 }
  0xce   : > { %3834 = vmatmul.mubr.msk.bf16.gmra.mxu0 %vm437_vm2, %v4034_v63  ;;  %3811 = vmatprep.mubr.msk.bf16.mxu1 %vm437_vm2, %v1843_v41 }
  0xcf   : > { %3837 = vmatprep.mubr.msk.bf16.mxu0 %vm437_vm2, %v4035_v62  ;;  %v2836_v62 = vsel %vm811_vm3, %v2833_v36, %v2835_v44  ;;  %v2536_v54 = vor.u32 %v2534_v38, %v2532_v30  ;;  %v2572_v38 = vrot.slane %v2570_v37, 1  ;;  %v2851_v37 = vrot.slane %v4793_v12, 1 }
  0xd5   : > { %3812 = vmatmul.mubr.msk.bf16.gmra.mxu1 %vm437_vm2, %v1845_v5  ;;  %v2540_v5 = vrot.slane %v2538_v32, 1 }
  0xd6   : > { %3838 = vmatmul.mubr.msk.bf16.gmra.mxu0 %vm437_vm2, %v4036_v22  ;;  %3815 = vmatprep.mubr.msk.bf16.mxu1 %vm437_vm2, %v1847_v52  ;;  %v2542_v22 = vshrl.u32 %v4713_v25, 16  ;;  %v2839_v52 = vrot.slane %v4693_v11, 1 }
  0xd7   : > { %3841 = vmatprep.mubr.msk.bf16.mxu0 %vm437_vm2, %v4037_v51  ;;  %v2541_v59 = vsel %vm320_vm1, %v2536_v54, %v2540_v5 }
  0xd8   : > { %v2544_v27 = vor.u32 %v2542_v22, %v2540_v5  ;;  %v4819_v22 = vld [vmem:[%s4232_s9 + $0x70] sm:$0xff]  }
  0xda   : > { %v2549_v50 = vsel %vm320_vm1, %v2544_v27, %v2548_v55  ;;  %v4826_v27 = vld [vmem:[%s4232_s9 + $0x78] sm:$0xff]  }
  0xdd   : > { %3816 = vmatmul.mubr.msk.bf16.gmra.mxu1 %vm437_vm2, %v1849_v60  ;;  %v2550_v60 = vshrl.u32 %v4721_v17, 16 }
  0xde   : > { %3842 = vmatmul.mubr.msk.bf16.gmra.mxu0 %vm437_vm2, %v4038_v7  ;;  %3851 = vmatprep.mubr.msk.bf16.mxu1 %vm437_vm2, %v2501_v33  ;;  %v4757_v7 = vld [vmem:[%s4232_s9 + $0x58] sm:$0xff]  }
  0xdf   : > { %3845 = vmatprep.mubr.msk.bf16.mxu0 %vm437_vm2, %v4039_v28  ;;  %v2840_v28 = vsel %vm811_vm3, %v2837_v48, %v2839_v52  ;;  %v2562_v0 = vshll.u32 %v4757_v7, 16  ;;  %v2552_v9 = vor.u32 %v2550_v60, %v2548_v55  ;;  %v2566_v25 = vshrl.u32 %v4757_v7, 16 }
  0xe1   : > { %v2557_v44 = vsel %vm320_vm1, %v2552_v9, %v2556_v4  ;;  %v2594_v4 = vshll.u32 %v4826_v27, 16 }
  0xe5   : > { %v4706_v43 = vpop.f32.mrf.mxu1  ;;  %3852 = vmatmul.mubr.msk.bf16.vlgmr.msra.gmra.mxu1 %vm437_vm2, %v2509_v23  ;;  %v2564_v23 = vrot.slane %v2562_v0, 1 }
  0xe6   : > { %v4699_v16 = vpop.f32.mrf.mxu0  ;;  %3846 = vmatmul.mubr.msk.bf16.gmra.mxu0 %vm437_vm2, %v4042_v8  ;;  %3855 = vmatprep.mubr.msk.bf16.mxu1 %vm437_vm2, %v2517_v40  ;;  %v2843_v8 = vrot.slane %v4721_v17, 1  ;;  %v2842_v40 = vsel %vm811_vm3, %v2839_v52, %v2841_v1  ;;  %v2574_v17 = vshrl.u32 %v4785_v14, 16 }
  0xe7   : > { %3881 = vmatprep.mubr.msk.bf16.mxu0 %vm437_vm2, %v2832_v24  ;;  %v4716_v56 = vpop.f32.mrf.mxu1  ;;  %v2565_v30 = vsel %vm320_vm1, %v2560_v21, %v2564_v23  ;;  %v2568_v48 = vor.u32 %v2566_v25, %v2564_v23 }
  0xe8   : > { %v4709_v6 = vpop.f32.mrf.mxu0  ;;  %v2844_v36 = vsel %vm811_vm3, %v2841_v1, %v2843_v8  ;;  %v2576_v54 = vor.u32 %v2574_v17, %v2572_v38  ;;  %v2590_v1 = vshrl.u32 %v4819_v22, 16 }
  0xe9   : > { %v4724_v63 = vpop.f32.mrf.mxu1 }
  0xea   : > { %v4718_v26 = vpop.f32.mrf.mxu0 }
  0xeb   : > { %v4732_v41 = vpop.f32.mrf.mxu1 }
  0xec   : > { %v4726_v13 = vpop.f32.mrf.mxu0 }
  0xed   : > { %v4742_v49 = vpop.f32.mrf.mxu1  ;;  %3856 = vmatmul.mubr.msk.bf16.gmra.mxu1 %vm437_vm2, %v2525_v34 }
  0xee   : > { %v4734_v42 = vpop.f32.mrf.mxu0  ;;  %3882 = vmatmul.mubr.msk.bf16.vlgmr.msra.gmra.mxu0 %vm437_vm2, %v2834_v31  ;;  %3859 = vmatprep.mubr.msk.bf16.mxu1 %vm437_vm2, %v2533_v19  ;;  %v2578_v31 = vshll.u32 %v4793_v12, 16  ;;  %v2847_v19 = vrot.slane %v4757_v7, 1 }
  0xef   : > { %3885 = vmatprep.mubr.msk.bf16.mxu0 %vm437_vm2, %v2836_v62  ;;  %v4752_v35 = vpop.f32.mrf.mxu1  ;;  %v2845_v62 = vrot.slane %v4749_v53, 1 }
  0xf0   : > { %v4745_v51 = vpop.f32.mrf.mxu0  ;;  %v2580_v53 = vrot.slane %v2578_v31, 1 }
  0xf1   : > { %v4760_v57 = vpop.f32.mrf.mxu1 }
  0xf2   : > { %v4754_v46 = vpop.f32.mrf.mxu0 }
  0xf3   : > { %v4768_v3 = vpop.f32.mrf.mxu1 }
  0xf4   : > { %v4762_v58 = vpop.f32.mrf.mxu0 }
  0xf5   : > { %v4778_v2 = vpop.f32.mrf.mxu1  ;;  %3860 = vmatmul.mubr.msk.bf16.gmra.mxu1 %vm437_vm2, %v2541_v59  ;;  %v2586_v59 = vshll.u32 %v4819_v22, 16 }
  0xf6   : > { %v4770_v33 = vpop.f32.mrf.mxu0  ;;  %3886 = vmatmul.mubr.msk.bf16.gmra.mxu0 %vm437_vm2, %v2838_v15  ;;  %3863 = vmatprep.mubr.msk.bf16.mxu1 %vm437_vm2, %v2549_v50  ;;  %v2846_v15 = vsel %vm811_vm3, %v2843_v8, %v2845_v62  ;;  %v2573_v50 = vsel %vm320_vm1, %v2568_v48, %v2572_v38 }
  0xf7   : > { %3889 = vmatprep.mubr.msk.bf16.mxu0 %vm437_vm2, %v2840_v28  ;;  %v4788_v11 = vpop.f32.mrf.mxu1 }
  0xf8   : > { %v4781_v10 = vpop.f32.mrf.mxu0 }
  0xf9   : > { %v4796_v18 = vpop.f32.mrf.mxu1 }
  0xfa   : > { %v4790_v24 = vpop.f32.mrf.mxu0 }
  0xfb   : > { %v4804_v45 = vpop.f32.mrf.mxu1 }
  0xfc   : > { %v4798_v20 = vpop.f32.mrf.mxu0 }
  0xfd   : > { %v3673_v32 = vpop.f32.mrf.mxu1  ;;  %3864 = vmatmul.mubr.msk.bf16.gmra.mxu1 %vm437_vm2, %v2557_v44 }
  0xfe   : > { %v4806_v29 = vpop.f32.mrf.mxu0  ;;  %3890 = vmatmul.mubr.msk.bf16.gmra.mxu0 %vm437_vm2, %v2842_v40  ;;  %v703_v47 = vadd.f32 %v3673_v32, %v4699_v16  ;;  %3867 = vmatprep.mubr.msk.bf16.mxu1 %vm437_vm2, %v2565_v30  ;;  %v2848_v16 = vsel %vm811_vm3, %v2845_v62, %v2847_v19  ;;  %v2584_v40 = vor.u32 %v2582_v39, %v2580_v53  ;;  %v2596_v62 = vrot.slane %v2594_v4, 1 }
  0xff   : > { %3893 = vmatprep.mubr.msk.bf16.mxu0 %vm437_vm2, %v2844_v36  ;;  %v694_v5 = vpop.f32.mrf.mxu1  ;;  %v2588_v36 = vrot.slane %v2586_v59, 1 }
 0x100   : > { %v4815_v34 = vpop.f32.mrf.mxu0  ;;  %v695_v55 = vadd.f32 %v694_v5, %v4709_v6  ;;  %v2581_v6 = vsel %vm320_vm1, %v2576_v54, %v2580_v53  ;;  %v2598_v53 = vshrl.u32 %v4826_v27, 16 }
 0x101   : > { %v3674_v28 = vpop.f32.mrf.mxu1  ;;  %v2592_v31 = vor.u32 %v2590_v1, %v2588_v36  ;;  %v2589_v12 = vsel %vm320_vm1, %v2584_v40, %v2588_v36 }
 0x102   : > { %v4823_v52 = vpop.f32.mrf.mxu0  ;;  %v706_v60 = vadd.f32 %v3674_v28, %v4718_v26  ;;  %v2849_v26 = vrot.slane %v4785_v14, 1 }
 0x103   : > { %v697_v61 = vpop.f32.mrf.mxu1 }
 0x104   : > { %v4830_v7 = vpop.f32.mrf.mxu0  ;;  %v698_v8 = vadd.f32 %v697_v61, %v4726_v13  ;;  %v4056_v13 = vld [vmem:[%s4232_s9 + $0x80] ss:$0 sps:$4 sm:$0x11]   ;;  %v2850_v38 = vsel %vm811_vm3, %v2847_v19, %v2849_v26  ;;  %s5161_s9 = scalar_lea.vmem [#allocation2], %s3921_s6 }
 0x105   : > { %v3677_v21 = vpop.f32.mrf.mxu1  ;;  %3868 = vmatmul.mubr.msk.bf16.gmra.mxu1 %vm437_vm2, %v2573_v50  ;;  %s3183_s11 = sshll.u32 %s5161_s9, 4  ;;  %s5281_s11 = int_to_ptr.vmem [resolvable:$true] %s3183_s11 }
 0x106   : > { %v3703_v0 = vpop.f32.mrf.mxu0  ;;  %3894 = vmatmul.mubr.msk.bf16.gmra.mxu0 %vm437_vm2, %v2846_v15  ;;  %v719_v44 = vadd.f32 %v3677_v21, %v4734_v42  ;;  %3871 = vmatprep.mubr.msk.bf16.mxu1 %vm437_vm2, %v2581_v6  ;;  %v2852_v42 = vsel %vm811_vm3, %v2849_v26, %v2851_v37  ;;  %s4057_s23 = scalar_lea.vmem %s5281_s11, 3584  ;;  %p4064_p1 = scmp.lt.s32.totalorder %s5281_s11, %s4062_s27 }
 0x107   : > { %v4842_v9 = vadd.f32 %v3703_v0, %v703_v47  ;;  %3897 = vmatprep.mubr.msk.bf16.mxu0 %vm437_vm2, %v2848_v16  ;;  %v710_v30 = vpop.f32.mrf.mxu1  ;;  %v2853_v16 = vrot.slane %v4819_v22, 1  ;;  %v2600_v0 = vor.u32 %v2598_v53, %v2596_v62  ;;  %p4058_p12 = scmp.ne.s32.totalorder %s5281_s11, %s4057_s23  ;;  %p4065_p2 = scmp.lt.s32.totalorder %s4063_s28, %s4057_s23 }
 0x108   : > { %v920_v23 = vpop.f32.mrf.mxu0  ;;  %v711_v14 = vadd.f32 %v710_v30, %v4745_v51  ;;  %v2597_v51 = vsel %vm320_vm1, %v2592_v31, %v2596_v62 }
 0x109   : > { %v4849_v25 = vadd.f32 %v920_v23, %v695_v55  ;;  %v3678_v47 = vpop.f32.mrf.mxu1  ;;  %v2602_v55 = vshll.u32 %v4056_v13, 16  ;;  %v2854_v22 = vsel %vm811_vm3, %v2851_v37, %v2853_v16  ;;  %v2857_v37 = vrot.slane %v4056_v13, 1  ;;  %p4059_p13 = pnand %p4058_p12, %p4198_p4  ;;  %p4066_p3 = por %p4065_p2, %p4064_p1 }
 0x10a   : > { %v3704_v17 = vpop.f32.mrf.mxu0  ;;  %v722_v5 = vadd.f32 %v3678_v47, %v4754_v46 }
 0x10b   : > { %v4854_v32 = vadd.f32 %v3704_v17, %v706_v60  ;;  %v713_v15 = vpop.f32.mrf.mxu1  ;;  %v2855_v60 = vrot.slane %v4826_v27, 1  ;;  %p4060_p0 = pneg %p4059_p13 }
 0x10c   : > { %v923_v48 = vpop.f32.mrf.mxu0  ;;  %v714_v19 = vadd.f32 %v713_v15, %v4762_v58  ;;  %v2604_v58 = vrot.slane %v2602_v55, 1 }
 0x10d   : > { %v4860_v54 = vadd.f32 %v923_v48, %v698_v8  ;;  %v3681_v46 = vpop.f32.mrf.mxu1  ;;  %3872 = vmatmul.mubr.msk.bf16.gmra.mxu1 %vm437_vm2, %v2589_v12  ;;  %v2856_v27 = vsel %vm811_vm3, %v2853_v16, %v2855_v60  ;;  %p4067_p5 = pnand %p4066_p3, %p4060_p0 }
 0x10e   : > { %v3707_v28 = vpop.f32.mrf.mxu0  ;;  %3898 = vmatmul.mubr.msk.bf16.gmra.mxu0 %vm437_vm2, %v2850_v38  ;;  %v735_v50 = vadd.f32 %v3681_v46, %v4770_v33  ;;  %3875 = vmatprep.mubr.msk.bf16.mxu1 %vm437_vm2, %v2597_v51  ;;  %v2605_v40 = vsel %vm320_vm1, %v2600_v0, %v2604_v58 }
 0x10f   : > { %v4866_v39 = vadd.f32 %v3707_v28, %v719_v44  ;;  %3901 = vmatprep.mubr.msk.bf16.mxu0 %vm437_vm2, %v2852_v42  ;;  %v726_v6 = vpop.f32.mrf.mxu1 }
 0x110   : > { %v936_v59 = vpop.f32.mrf.mxu0  ;;  %v727_v4 = vadd.f32 %v726_v6, %v4781_v10 }
 0x111   : > { %v4873_v61 = vadd.f32 %v936_v59, %v711_v14  ;;  %v3682_v26 = vpop.f32.mrf.mxu1 }
 0x112   : > { %v3708_v1 = vpop.f32.mrf.mxu0  ;;  %v738_v33 = vadd.f32 %v3682_v26, %v4790_v24 }
 0x113   : > { %v4877_v8 = vadd.f32 %v3708_v1, %v722_v5  ;;  %v729_v36 = vpop.f32.mrf.mxu1 }
 0x114   : > { %v939_v21 = vpop.f32.mrf.mxu0  ;;  %v730_v10 = vadd.f32 %v729_v36, %v4798_v20  ;;  %v2858_v20 = vsel %vm811_vm3, %v2855_v60, %v2857_v37 }
 0x115   : > { %v4882_v23 = vadd.f32 %v939_v21, %v714_v19  ;;  %v3685_v17 = vpop.f32.mrf.mxu1  ;;  %3876 = vmatmul.mubr.msk.bf16.gmra.mxu1 %vm437_vm2, %v2605_v40 }
 0x116   : > { %v3711_v44 = vpop.f32.mrf.mxu0  ;;  %3902 = vmatmul.mubr.msk.bf16.gmra.mxu0 %vm437_vm2, %v2854_v22  ;;  %v751_v24 = vadd.f32 %v3685_v17, %v4806_v29 }
 0x117   : > { %v4887_v30 = vadd.f32 %v3711_v44, %v735_v50  ;;  %3905 = vmatprep.mubr.msk.bf16.mxu0 %vm437_vm2, %v2856_v27  ;;  %v742_v14 = vpop.f32.mrf.mxu1 }
 0x118   : > { %v952_v31 = vpop.f32.mrf.mxu0  ;;  %v743_v47 = vadd.f32 %v742_v14, %v4815_v34 }
 0x119   : > { %v4892_v62 = vadd.f32 %v952_v31, %v727_v4  ;;  %v3686_v12 = vpop.f32.mrf.mxu1 }
 0x11a   : > { %v3712_v38 = vpop.f32.mrf.mxu0  ;;  %v754_v13 = vadd.f32 %v3686_v12, %v4823_v52 }
 0x11b   : > { %v4895_v48 = vadd.f32 %v3712_v38, %v738_v33  ;;  %v745_v53 = vpop.f32.mrf.mxu1 }
 0x11c   : > { %v955_v42 = vpop.f32.mrf.mxu0  ;;  %v746_v29 = vadd.f32 %v745_v53, %v4830_v7 }
 0x11d   : > { %v4899_v5 = vadd.f32 %v955_v42, %v730_v10  ;;  %v3689_v28 = vpop.f32.mrf.mxu1 }
 0x11e   : > { %v3715_v55 = vpop.f32.mrf.mxu0  ;;  %3906 = vmatmul.mubr.msk.bf16.gmra.mxu0 %vm437_vm2, %v2858_v20  ;;  %v767_v51 = vadd.f32 %v3689_v28, %v4706_v43 }
 0x11f   : > { %v4903_v15 = vadd.f32 %v3715_v55, %v751_v24  ;;  %v758_v16 = vpop.f32.mrf.mxu1 }
 0x120   : > { %v968_v34 = vpop.f32.mrf.mxu0  ;;  %v759_v52 = vadd.f32 %v758_v16, %v4716_v56 }
 0x121   : > { %v4906_v19 = vadd.f32 %v968_v34, %v743_v47  ;;  %v3690_v60 = vpop.f32.mrf.mxu1 }
 0x122   : > { %v3716_v46 = vpop.f32.mrf.mxu0  ;;  %v770_v0 = vadd.f32 %v3690_v60, %v4724_v63 }
 0x123   : > { %v4909_v59 = vadd.f32 %v3716_v46, %v754_v13  ;;  %v761_v7 = vpop.f32.mrf.mxu1 }
 0x124   : > { %v971_v50 = vpop.f32.mrf.mxu0  ;;  %v762_v1 = vadd.f32 %v761_v7, %v4732_v41 }
 0x125   : > { %v4912_v58 = vadd.f32 %v971_v50, %v746_v29  ;;  %v3693_v43 = vpop.f32.mrf.mxu1 }
 0x126   : > { %v3719_v6 = vpop.f32.mrf.mxu0  ;;  %v783_v26 = vadd.f32 %v3693_v43, %v4742_v49 }
 0x127   : > { %v4915_v4 = vadd.f32 %v3719_v6, %v767_v51  ;;  %v774_v56 = vpop.f32.mrf.mxu1 }
 0x128   : > { %v984_v22 = vpop.f32.mrf.mxu0  ;;  %v775_v33 = vadd.f32 %v774_v56, %v4752_v35 }
 0x129   : > { %v4918_v21 = vadd.f32 %v984_v22, %v759_v52  ;;  %v3694_v63 = vpop.f32.mrf.mxu1 }
 0x12a   : > { %v3720_v27 = vpop.f32.mrf.mxu0  ;;  %v786_v44 = vadd.f32 %v3694_v63, %v4760_v57 }
 0x12b   : > { %v4921_v40 = vadd.f32 %v3720_v27, %v770_v0  ;;  %v777_v41 = vpop.f32.mrf.mxu1 }
 0x12c   : > { %v987_v36 = vpop.f32.mrf.mxu0  ;;  %v778_v17 = vadd.f32 %v777_v41, %v4768_v3 }
 0x12d   : > { %v4924_v10 = vadd.f32 %v987_v36, %v762_v1  ;;  %v3697_v49 = vpop.f32.mrf.mxu1 }
 0x12e   : > { %v3723_v37 = vpop.f32.mrf.mxu0  ;;  %v799_v14 = vadd.f32 %v3697_v49, %v4778_v2 }
 0x12f   : > { %v4927_v31 = vadd.f32 %v3723_v37, %v783_v26  ;;  %v790_v35 = vpop.f32.mrf.mxu1 }
 0x130   : > { %v1000_v24 = vpop.f32.mrf.mxu0  ;;  %v791_v20 = vadd.f32 %v790_v35, %v4788_v11 }
 0x131   : > { %v4930_v38 = vadd.f32 %v1000_v24, %v775_v33  ;;  %v3698_v57 = vpop.f32.mrf.mxu1 }
 0x132   : > { %v3724_v47 = vpop.f32.mrf.mxu0  ;;  %v802_v13 = vadd.f32 %v3698_v57, %v4796_v18 }
 0x133   : > { %v4933_v12 = vadd.f32 %v3724_v47, %v786_v44  ;;  %v793_v3 = vpop.f32.mrf.mxu1 }
 0x134   : > { %v1003_v42 = vpop.f32.mrf.mxu0  ;;  %v794_v29 = vadd.f32 %v793_v3, %v4804_v45 }
 0x135   : > { %v4936_v53 = vadd.f32 %v1003_v42, %v778_v17  ;;  %v3733_v2 = vpop.f32.mrf.mxu1 }
 0x136   : > { %v3727_v55 = vpop.f32.mrf.mxu0  ;;  %v1351_v51 = vadd.f32 %v3733_v2, %v4842_v9 }
 0x137   : > { %v4939_v28 = vadd.f32 %v3727_v55, %v799_v14  ;;  %v1238_v11 = vpop.f32.mrf.mxu1 }
 0x138   : > { %v1016_v34 = vpop.f32.mrf.mxu0  ;;  %v1349_v52 = vadd.f32 %v1238_v11, %v4849_v25 }
 0x139   : > { %v4942_v16 = vadd.f32 %v1016_v34, %v791_v20  ;;  %v3734_v18 = vpop.f32.mrf.mxu1 }
 0x13a   : > { %v3728_v46 = vpop.f32.mrf.mxu0  ;;  %v1352_v0 = vadd.f32 %v3734_v18, %v4854_v32 }
 0x13b   : > { %v4945_v60 = vadd.f32 %v3728_v46, %v802_v13  ;;  %v1241_v45 = vpop.f32.mrf.mxu1 }
 0x13c   : > { %v1019_v50 = vpop.f32.mrf.mxu0  ;;  %v1350_v1 = vadd.f32 %v1241_v45, %v4860_v54 }
 0x13d   : > { %v4948_v7 = vadd.f32 %v1019_v50, %v794_v29  ;;  %v3737_v9 = vpop.f32.mrf.mxu1 }
 0x13e   : > { %v3763_v6 = vpop.f32.mrf.mxu0  ;;  %v1355_v26 = vadd.f32 %v3737_v9, %v4866_v39 }
 0x13f   : > { %v4951_v43 = vadd.f32 %v3763_v6, %v1351_v51  ;;  %v1254_v25 = vpop.f32.mrf.mxu1 }
 0x140   : > { %v1676_v22 = vpop.f32.mrf.mxu0  ;;  %v1353_v33 = vadd.f32 %v1254_v25, %v4873_v61 }
 0x141   : > { %v4954_v56 = vadd.f32 %v1676_v22, %v1349_v52  ;;  %v3738_v32 = vpop.f32.mrf.mxu1 }
 0x142   : > { %v3764_v27 = vpop.f32.mrf.mxu0  ;;  %v1356_v44 = vadd.f32 %v3738_v32, %v4877_v8 }
 0x143   : > { %v4957_v63 = vadd.f32 %v3764_v27, %v1352_v0  ;;  %v1257_v54 = vpop.f32.mrf.mxu1 }
 0x144   : > { %v1679_v36 = vpop.f32.mrf.mxu0  ;;  %v1354_v17 = vadd.f32 %v1257_v54, %v4882_v23 }
 0x145   : > { %v4960_v41 = vadd.f32 %v1679_v36, %v1350_v1  ;;  %v3741_v39 = vpop.f32.mrf.mxu1 }
 0x146   : > { %v3767_v37 = vpop.f32.mrf.mxu0  ;;  %v1359_v14 = vadd.f32 %v3741_v39, %v4887_v30 }
 0x147   : > { %v4963_v49 = vadd.f32 %v3767_v37, %v1355_v26  ;;  %v1270_v61 = vpop.f32.mrf.mxu1 }
 0x148   : > { %v1692_v24 = vpop.f32.mrf.mxu0  ;;  %v1357_v20 = vadd.f32 %v1270_v61, %v4892_v62 }
 0x149   : > { %v4966_v35 = vadd.f32 %v1692_v24, %v1353_v33  ;;  %v3742_v8 = vpop.f32.mrf.mxu1 }
 0x14a   : > { %v3768_v47 = vpop.f32.mrf.mxu0  ;;  %v1360_v13 = vadd.f32 %v3742_v8, %v4895_v48 }
 0x14b   : > { %v4969_v57 = vadd.f32 %v3768_v47, %v1356_v44  ;;  %v1273_v23 = vpop.f32.mrf.mxu1 }
 0x14c   : > { %v1695_v42 = vpop.f32.mrf.mxu0  ;;  %v1358_v29 = vadd.f32 %v1273_v23, %v4899_v5 }
 0x14d   : > { %v4972_v3 = vadd.f32 %v1695_v42, %v1354_v17  ;;  %v3745_v30 = vpop.f32.mrf.mxu1 }
 0x14e   : > { %v3771_v55 = vpop.f32.mrf.mxu0  ;;  %v1363_v51 = vadd.f32 %v3745_v30, %v4903_v15 }
 0x14f   : > { %v4975_v2 = vadd.f32 %v3771_v55, %v1359_v14  ;;  %v1286_v62 = vpop.f32.mrf.mxu1 }
 0x150   : > { %v1708_v34 = vpop.f32.mrf.mxu0  ;;  %v1361_v52 = vadd.f32 %v1286_v62, %v4906_v19 }
 0x151   : > { %v4978_v11 = vadd.f32 %v1708_v34, %v1357_v20  ;;  %v3746_v48 = vpop.f32.mrf.mxu1 }
 0x152   : > { %v3772_v46 = vpop.f32.mrf.mxu0  ;;  %v1364_v0 = vadd.f32 %v3746_v48, %v4909_v59 }
 0x153   : > { %v4981_v18 = vadd.f32 %v3772_v46, %v1360_v13  ;;  %v1289_v5 = vpop.f32.mrf.mxu1 }
 0x154   : > { %v1711_v50 = vpop.f32.mrf.mxu0  ;;  %v1362_v1 = vadd.f32 %v1289_v5, %v4912_v58 }
 0x155   : > { %v4984_v45 = vadd.f32 %v1711_v50, %v1358_v29  ;;  %v3749_v15 = vpop.f32.mrf.mxu1 }
 0x156   : > { %v3775_v6 = vpop.f32.mrf.mxu0  ;;  %v1367_v26 = vadd.f32 %v3749_v15, %v4915_v4 }
 0x157   : > { %v4987_v9 = vadd.f32 %v3775_v6, %v1363_v51  ;;  %v1302_v19 = vpop.f32.mrf.mxu1 }
 0x158   : > { %v1724_v22 = vpop.f32.mrf.mxu0  ;;  %v1365_v33 = vadd.f32 %v1302_v19, %v4918_v21 }
 0x159   : > { %v4990_v25 = vadd.f32 %v1724_v22, %v1361_v52  ;;  %v3750_v59 = vpop.f32.mrf.mxu1 }
 0x15a   : > { %v3776_v27 = vpop.f32.mrf.mxu0  ;;  %v1368_v44 = vadd.f32 %v3750_v59, %v4921_v40 }
 0x15b   : > { %v4993_v32 = vadd.f32 %v3776_v27, %v1364_v0  ;;  %v1305_v58 = vpop.f32.mrf.mxu1 }
 0x15c   : > { %v1727_v36 = vpop.f32.mrf.mxu0  ;;  %v1366_v17 = vadd.f32 %v1305_v58, %v4924_v10 }
 0x15d   : > { %v4996_v54 = vadd.f32 %v1727_v36, %v1362_v1  ;;  %v3753_v4 = vpop.f32.mrf.mxu1 }
 0x15e   : > { %v3779_v37 = vpop.f32.mrf.mxu0  ;;  %v1371_v14 = vadd.f32 %v3753_v4, %v4927_v31 }
 0x15f   : > { %v4999_v39 = vadd.f32 %v3779_v37, %v1367_v26  ;;  %v1318_v21 = vpop.f32.mrf.mxu1 }
 0x160   : > { %v1740_v24 = vpop.f32.mrf.mxu0  ;;  %v1369_v20 = vadd.f32 %v1318_v21, %v4930_v38 }
 0x161   : > { %v5002_v61 = vadd.f32 %v1740_v24, %v1365_v33  ;;  %v3754_v40 = vpop.f32.mrf.mxu1 }
 0x162   : > { %v3780_v47 = vpop.f32.mrf.mxu0  ;;  %v1372_v13 = vadd.f32 %v3754_v40, %v4933_v12 }
 0x163   : > { %v5005_v8 = vadd.f32 %v3780_v47, %v1368_v44  ;;  %v1321_v10 = vpop.f32.mrf.mxu1 }
 0x164   : > { %v1743_v42 = vpop.f32.mrf.mxu0  ;;  %v1370_v29 = vadd.f32 %v1321_v10, %v4936_v53 }
 0x165   : > { %5343 = vst [vmem:[#allocation5_spill] sm:$0xff] %v5005_v8  ;;  %v5008_v23 = vadd.f32 %v1743_v42, %v1366_v17  ;;  %v3757_v31 = vpop.f32.mrf.mxu1 }
 0x166   : > { %v3783_v55 = vpop.f32.mrf.mxu0  ;;  %v1375_v51 = vadd.f32 %v3757_v31, %v4939_v28 }
 0x167   : > { %5344 = vst [vmem:[#allocation6_spill] sm:$0xff] %v5008_v23  ;;  %v5011_v30 = vadd.f32 %v3783_v55, %v1371_v14  ;;  %v1334_v38 = vpop.f32.mrf.mxu1 }
 0x168   : > { %v1756_v34 = vpop.f32.mrf.mxu0  ;;  %v1373_v52 = vadd.f32 %v1334_v38, %v4942_v16 }
 0x169   : > { %5345 = vst [vmem:[#allocation7_spill] sm:$0xff] %v5011_v30  ;;  %v5014_v62 = vadd.f32 %v1756_v34, %v1369_v20  ;;  %v3758_v12 = vpop.f32.mrf.mxu1 }
 0x16a   : > { %v3784_v46 = vpop.f32.mrf.mxu0  ;;  %v1376_v0 = vadd.f32 %v3758_v12, %v4945_v60 }
 0x16b   : > { %5346 = vst [vmem:[#allocation8_spill] sm:$0xff] %v5014_v62  ;;  %v5017_v48 = vadd.f32 %v3784_v46, %v1372_v13  ;;  %v1337_v53 = vpop.f32.mrf.mxu1 }
 0x16c   : > { %v1759_v50 = vpop.f32.mrf.mxu0  ;;  %v1374_v1 = vadd.f32 %v1337_v53, %v4948_v7 }
 0x16d   : > { %5347 = vst [vmem:[#allocation9_spill] sm:$0xff] %v5017_v48  ;;  %v5020_v5 = vadd.f32 %v1759_v50, %v1370_v29  ;;  %v3793_v28 = vpop.f32.mrf.mxu1 }
 0x16e   : > { %v3787_v6 = vpop.f32.mrf.mxu0 }
 0x16f   : > { %5348 = vst [vmem:[#allocation10_spill] sm:$0xff] %v5020_v5  ;;  %v5023_v15 = vadd.f32 %v3787_v6, %v1375_v51  ;;  %v1929_v19 = vpop.f32.mrf.mxu1 }
 0x170   : > { %v1772_v22 = vpop.f32.mrf.mxu0 }
 0x171   : > { %5349 = vst [vmem:[#allocation11_spill] sm:$0xff] %v5023_v15  ;;  %v5025_v26 = vadd.f32 %v1772_v22, %v1373_v52  ;;  %v5029_v33 = vpop.f32.mrf.mxu1 }
 0x172   : > { %v3788_v16 = vpop.f32.mrf.mxu0 }
 0x173   : > { %5350 = vst [vmem:[#allocation12_spill] sm:$0xff] %v5025_v26  ;;  %v5027_v27 = vadd.f32 %v3788_v16, %v1376_v0  ;;  %v5033_v36 = vpop.f32.mrf.mxu1 }
 0x174   : > { %v1775_v59 = vpop.f32.mrf.mxu0 }
 0x175   : > { %5351 = vst [vmem:[#allocation13_spill] sm:$0xff] %v5027_v27  ;;  %v5031_v60 = vadd.f32 %v1775_v59, %v1374_v1  ;;  %v5035_v58 = vpop.f32.mrf.mxu1 }
 0x176   : > { %v3823_v44 = vpop.f32.mrf.mxu0 }
 0x177   : > { %5352 = vst [vmem:[#allocation14_spill] sm:$0xff] %v5031_v60  ;;  %v5037_v37 = vpop.f32.mrf.mxu1 }
 0x178   : > { %v2247_v7 = vpop.f32.mrf.mxu0 }
 0x179   : > { %v5041_v4 = vpop.f32.mrf.mxu1 }
 0x17a   : > { %v5039_v17 = vpop.f32.mrf.mxu0 }
 0x17b   : > { %v5045_v14 = vpop.f32.mrf.mxu1 }
 0x17c   : > { %v5043_v24 = vpop.f32.mrf.mxu0 }
 0x17d   : > { %v5049_v47 = vpop.f32.mrf.mxu1 }
 0x17e   : > { %v5047_v21 = vpop.f32.mrf.mxu0 }
 0x17f   : > { %v5053_v40 = vpop.f32.mrf.mxu1 }
 0x180   : > { %v5051_v20 = vpop.f32.mrf.mxu0 }
 0x181   : > { %v5057_v13 = vpop.f32.mrf.mxu1 }
 0x182   : > { %v5055_v42 = vpop.f32.mrf.mxu0 }
 0x183   : > { %v5061_v55 = vpop.f32.mrf.mxu1 }
 0x184   : > { %v5059_v10 = vpop.f32.mrf.mxu0 }
 0x185   : > { %v5065_v31 = vpop.f32.mrf.mxu1 }
 0x186   : > { %v5063_v29 = vpop.f32.mrf.mxu0 }
 0x187   : > { %v5069_v51 = vpop.f32.mrf.mxu1 }
 0x188   : > { %v5067_v34 = vpop.f32.mrf.mxu0 }
 0x189   : > { %v5073_v46 = vpop.f32.mrf.mxu1 }
 0x18a   : > { %v5071_v38 = vpop.f32.mrf.mxu0 }
 0x18b   : > { %v5077_v12 = vpop.f32.mrf.mxu1 }
 0x18c   : > { %v5075_v52 = vpop.f32.mrf.mxu0 }
 0x18d   : > { %v5081_v0 = vpop.f32.mrf.mxu1 }
 0x18e   : > { %v5079_v50 = vpop.f32.mrf.mxu0 }
 0x18f   : > { %v5085_v6 = vpop.f32.mrf.mxu1 }
 0x190   : > { %v5083_v53 = vpop.f32.mrf.mxu0  ;;  %5353 = vst [vmem:[#allocation15_spill] sm:$0xff] %v5085_v6 }
 0x191   : > { %v5089_v22 = vpop.f32.mrf.mxu1 }
 0x192   : > { %v5087_v1 = vpop.f32.mrf.mxu0  ;;  %5354 = vst [vmem:[#allocation16_spill] sm:$0xff] %v5089_v22 }
 0x193   : > { %v5093_v59 = vpop.f32.mrf.mxu1 }
 0x194   : > { %v5091_v16 = vpop.f32.mrf.mxu0  ;;  %5355 = vst [vmem:[#allocation17_spill] sm:$0xff] %v5093_v59 }
 0x195   : > { %v5097_v27 = vpop.f32.mrf.mxu1 }
 0x196   : > { %v5095_v60 = vpop.f32.mrf.mxu0  ;;  %5357 = vst [vmem:[#allocation19_spill] sm:$0xff] %v5097_v27 }
 0x197   : > { %5356 = vst [vmem:[#allocation18_spill] sm:$0xff] %v5095_v60  ;;  %v5101_v15 = vpop.f32.mrf.mxu1 }
 0x198   : > { %v5099_v26 = vpop.f32.mrf.mxu0  ;;  %5359 = vst [vmem:[#allocation21_spill] sm:$0xff] %v5101_v15 }
 0x199   : > { %5358 = vst [vmem:[#allocation20_spill] sm:$0xff] %v5099_v26  ;;  %v5105_v48 = vpop.f32.mrf.mxu1 }
 0x19a   : > { %v5103_v5 = vpop.f32.mrf.mxu0  ;;  %5361 = vst [vmem:[#allocation23_spill] sm:$0xff] %v5105_v48 }
 0x19b   : > { %5360 = vst [vmem:[#allocation22_spill] sm:$0xff] %v5103_v5  ;;  %v5109_v30 = vpop.f32.mrf.mxu1 }
 0x19c   : > { %v5107_v62 = vpop.f32.mrf.mxu0  ;;  %5363 = vst [vmem:[#allocation25_spill] sm:$0xff] %v5109_v30 }
 0x19d   : > { %5362 = vst [vmem:[#allocation24_spill] sm:$0xff] %v5107_v62  ;;  %v5113_v59 = vpop.f32.mrf.mxu1 }
 0x19e   : > { %v5111_v23 = vpop.f32.mrf.mxu0  ;;  %5365 = vst [vmem:[#allocation27_spill] sm:$0xff] %v5113_v59  ;;  %v2042_v59 = vadd.f32 %v3793_v28, %v4951_v43  ;;  %v5145_v43 = vld [vmem:[%s5339_s2] ss:$0 sm:$0xff] }
 0x19f   : > { %5364 = vst [vmem:[#allocation26_spill] sm:$0xff] %v5111_v23  ;;  %v5117_v27 = vpop.f32.mrf.mxu1 }
 0x1a0   : > { %v5115_v22 = vpop.f32.mrf.mxu0  ;;  %5367 = vst [vmem:[#allocation29_spill] sm:$0xff] %v5117_v27  ;;  %v2040_v27 = vadd.f32 %v1929_v19, %v4954_v56  ;;  %v2041_v56 = vadd.f32 %v5033_v36, %v4960_v41 }
 0x1a1   : > { %5366 = vst [vmem:[#allocation28_spill] sm:$0xff] %v5115_v22  ;;  %v5121_v15 = vpop.f32.mrf.mxu1 }
 0x1a2   : > { %v5119_v26 = vpop.f32.mrf.mxu0  ;;  %5369 = vst [vmem:[#allocation31_spill] sm:$0xff] %v5121_v15 }
 0x1a3   : > { %5368 = vst [vmem:[#allocation30_spill] sm:$0xff] %v5119_v26  ;;  %v5125_v48 = vpop.f32.mrf.mxu1  ;;  %v2360_v26 = vadd.f32 %v3823_v44, %v2042_v59 }
 0x1a4   : > { %v5123_v5 = vpop.f32.mrf.mxu0  ;;  %5371 = vst [vmem:[#allocation33_spill] sm:$0xff] %v5125_v48  ;;  %v2043_v48 = vadd.f32 %v5029_v33, %v4957_v63  ;;  %v2046_v63 = vadd.f32 %v5035_v58, %v4963_v49 }
 0x1a5   : > { %5370 = vst [vmem:[#allocation32_spill] sm:$0xff] %v5123_v5  ;;  %v3853_v30 = vpop.f32.mrf.mxu1  ;;  %v2358_v5 = vadd.f32 %v2247_v7, %v2040_v27  ;;  %v2359_v27 = vadd.f32 %v5043_v24, %v2041_v56 }
 0x1a6   : > { %v5127_v62 = vpop.f32.mrf.mxu0  ;;  %v2361_v28 = vadd.f32 %v5039_v17, %v2043_v48  ;;  %v2364_v41 = vadd.f32 %v5047_v21, %v2046_v63 }
 0x1a7   : > { %5372 = vst [vmem:[#allocation34_spill] sm:$0xff] %v5127_v62  ;;  %v2685_v8 = vpop.f32.mrf.mxu1  ;;  %v2798_v62 = vadd.f32 %v3853_v30, %v2360_v26 }
 0x1a8   : > { %v5129_v23 = vpop.f32.mrf.mxu0  ;;  %v2796_v19 = vadd.f32 %v2685_v8, %v2358_v5  ;;  %v2047_v5 = vadd.f32 %v5041_v4, %v4969_v57 }
 0x1a9   : > { %5373 = vst [vmem:[#allocation35_spill] sm:$0xff] %v5129_v23  ;;  %v3854_v15 = vpop.f32.mrf.mxu1 }
 0x1aa   : > { %v5132_v22 = vpop.f32.mrf.mxu0  ;;  %v2799_v33 = vadd.f32 %v3854_v15, %v2361_v28  ;;  %v2365_v57 = vadd.f32 %v5055_v42, %v2047_v5  ;;  %v2049_v5 = vadd.f32 %v5061_v55, %v4984_v45 }
 0x1ab   : > { %v2688_v6 = vpop.f32.mrf.mxu1 }
 0x1ac   : > { %v5136_v60 = vpop.f32.mrf.mxu0  ;;  %v2797_v8 = vadd.f32 %v2688_v6, %v2359_v27  ;;  %v2045_v6 = vadd.f32 %v5045_v14, %v4972_v3 }
 0x1ad   : > { %5374 = vst [vmem:[#allocation36_spill] sm:$0xff] %v5136_v60  ;;  %v3857_v30 = vpop.f32.mrf.mxu1  ;;  %v2044_v60 = vadd.f32 %v5037_v37, %v4966_v35 }
 0x1ae   : > { %v3883_v23 = vpop.f32.mrf.mxu0  ;;  %v2802_v24 = vadd.f32 %v3857_v30, %v2364_v41  ;;  %v2363_v63 = vadd.f32 %v5059_v10, %v2045_v6 }
 0x1af   : > { %v3051_v44 = vadd.f32 %v3883_v23, %v2798_v62  ;;  %v2701_v36 = vpop.f32.mrf.mxu1  ;;  %v2362_v15 = vadd.f32 %v5051_v20, %v2044_v60 }
 0x1b0   : > { %v2938_v26 = vpop.f32.mrf.mxu0 }
 0x1b1   : > { %v3086_v7 = vadd.f32 %v5145_v43, %v3051_v44  ;;  %v3049_v59 = vadd.f32 %v2938_v26, %v2796_v19  ;;  %v3858_v58 = vpop.f32.mrf.mxu1  ;;  %v2800_v20 = vadd.f32 %v2701_v36, %v2362_v15  ;;  %v2050_v44 = vadd.f32 %v5049_v47, %v4975_v2 }
 0x1b2   : > { %v3884_v48 = vpop.f32.mrf.mxu0  ;;  %v2803_v27 = vadd.f32 %v3858_v58, %v2365_v57 }
 0x1b3   : > { %v3114_v23 = vmax.f32 %v3086_v7, 0.0  ;;  %v3084_v62 = vadd.f32 %v5145_v43, %v3049_v59  ;;  %v3052_v49 = vadd.f32 %v3884_v48, %v2799_v33  ;;  %v2704_v4 = vpop.f32.mrf.mxu1  ;;  %v2048_v33 = vadd.f32 %v5053_v40, %v4978_v11 }
 0x1b4   : > { %v2941_v17 = vpop.f32.mrf.mxu0  ;;  %v2368_v7 = vadd.f32 %v5063_v29, %v2050_v44  ;;  %v2801_v36 = vadd.f32 %v2704_v4, %v2363_v63  ;;  %v2051_v48 = vadd.f32 %v5057_v13, %v4981_v18  ;;  %v2052_v4 = vadd.f32 %v5069_v51, %v4990_v25 }
 0x1b5   : > { %3142 = vst [vmem:[%s5161_s9 + $0x10] sm:$0xff] %v3114_v23  ;;  %v3112_v35 = vmax.f32 %v3084_v62, 0.0  ;;  %v3087_v37 = vadd.f32 %v5145_v43, %v3052_v49  ;;  %v3050_v21 = vadd.f32 %v2941_v17, %v2797_v8  ;;  %v3861_v30 = vpop.f32.mrf.mxu1  ;;  %v2366_v8 = vadd.f32 %v5067_v34, %v2048_v33 }
 0x1b6   : > { %v3887_v60 = vpop.f32.mrf.mxu0  ;;  %v2806_v49 = vadd.f32 %v3861_v30, %v2368_v7  ;;  %v2369_v15 = vadd.f32 %v5071_v38, %v2051_v48  ;;  %v2370_v44 = vadd.f32 %v5083_v53, %v2052_v4  ;;  %v2058_v7 = vadd.f32 %v5081_v0, %v4999_v39  ;;  %v5376_v48 = vld [vmem:[#allocation18_spill] sm:$0xff] }
 0x1b7   : > { %3140 = vst [vmem:[%s5161_s9] sm:$0xff] %v3112_v35  ;;  %v3115_v56 = vmax.f32 %v3087_v37, 0.0  ;;  %v3085_v28 = vadd.f32 %v5145_v43, %v3050_v21  ;;  %v3055_v19 = vadd.f32 %v3887_v60, %v2802_v24  ;;  %v2717_v59 = vpop.f32.mrf.mxu1  ;;  %v2054_v35 = vadd.f32 %v5065_v31, %v4987_v9 }
 0x1b8   : > { %v2954_v26 = vpop.f32.mrf.mxu0  ;;  %v2804_v24 = vadd.f32 %v2717_v59, %v2366_v8  ;;  %v2367_v37 = vadd.f32 %v5075_v52, %v2049_v5  ;;  %v2376_v8 = vadd.f32 %v5376_v48, %v2058_v7  ;;  %v5379_v5 = vld [vmem:[#allocation20_spill] sm:$0xff]  ;;  %v5389_v7 = vld [vmem:[#allocation9_spill] sm:$0xff] }
 0x1b9   : > { %3143 = vst [vmem:[%s5161_s9 + $0x18] sm:$0xff] %v3115_v56  ;;  %v3113_v3 = vmax.f32 %v3085_v28, 0.0  ;;  %v3090_v14 = vadd.f32 %v5145_v43, %v3055_v19  ;;  %v3053_v42 = vadd.f32 %v2954_v26, %v2800_v20  ;;  %v3862_v23 = vpop.f32.mrf.mxu1  ;;  %v2372_v60 = vadd.f32 %v5079_v50, %v2054_v35  ;;  %v5381_v35 = vld [vmem:[#allocation17_spill] sm:$0xff] }
 0x1ba   : > { %v3888_v41 = vpop.f32.mrf.mxu0  ;;  %v2807_v57 = vadd.f32 %v3862_v23, %v2369_v15  ;;  %v2055_v19 = vadd.f32 %v5073_v46, %v4993_v32 }
 0x1bb   : > { %3141 = vst [vmem:[%s5161_s9 + $0x8] sm:$0xff] %v3113_v3  ;;  %v3118_v2 = vmax.f32 %v3090_v14, 0.0  ;;  %v3088_v47 = vadd.f32 %v5145_v43, %v3053_v42  ;;  %v3056_v10 = vadd.f32 %v3888_v41, %v2803_v27  ;;  %v2720_v58 = vpop.f32.mrf.mxu1  ;;  %v2053_v27 = vadd.f32 %v5077_v12, %v4996_v54 }
 0x1bc   : > { %v2957_v62 = vpop.f32.mrf.mxu0  ;;  %v2805_v28 = vadd.f32 %v2720_v58, %v2367_v37  ;;  %v2373_v3 = vadd.f32 %v5087_v1, %v2055_v19 }
 0x1bd   : > { %3146 = vst [vmem:[%s5161_s9 + $0x30] sm:$0xff] %v3118_v2  ;;  %v3116_v11 = vmax.f32 %v3088_v47, 0.0  ;;  %v3091_v40 = vadd.f32 %v5145_v43, %v3056_v10  ;;  %v3054_v29 = vadd.f32 %v2957_v62, %v2801_v36  ;;  %v3865_v21 = vpop.f32.mrf.mxu1  ;;  %v2371_v59 = vadd.f32 %v5091_v16, %v2053_v27  ;;  %v5375_v47 = vld [vmem:[#allocation15_spill] sm:$0xff]  ;;  %v5388_v27 = vld [vmem:[#allocation26_spill] sm:$0xff] }
 0x1be   : > { %v3891_v17 = vpop.f32.mrf.mxu0  ;;  %v2810_v26 = vadd.f32 %v3865_v21, %v2372_v60  ;;  %v2056_v10 = vadd.f32 %v5375_v47, %v5002_v61  ;;  %v5382_v21 = vld [vmem:[#allocation22_spill] sm:$0xff] }
 0x1bf   : > { %3144 = vst [vmem:[%s5161_s9 + $0x20] sm:$0xff] %v3116_v11  ;;  %v3119_v18 = vmax.f32 %v3091_v40, 0.0  ;;  %v3089_v13 = vadd.f32 %v5145_v43, %v3054_v29  ;;  %v3059_v34 = vadd.f32 %v3891_v17, %v2806_v49  ;;  %v2733_v20 = vpop.f32.mrf.mxu1  ;;  %v5377_v11 = vld [vmem:[#allocation5_spill] sm:$0xff]  ;;  %v5378_v40 = vld [vmem:[#allocation16_spill] sm:$0xff] }
 0x1c0   : > { %v2970_v6 = vpop.f32.mrf.mxu0  ;;  %v2808_v33 = vadd.f32 %v2733_v20, %v2370_v44  ;;  %v2059_v29 = vadd.f32 %v5378_v40, %v5377_v11  ;;  %v2374_v15 = vadd.f32 %v5379_v5, %v2056_v10  ;;  %v5383_v20 = vld [vmem:[#allocation7_spill] sm:$0xff] }
 0x1c1   : > { %3147 = vst [vmem:[%s5161_s9 + $0x38] sm:$0xff] %v3119_v18  ;;  %v3117_v45 = vmax.f32 %v3089_v13, 0.0  ;;  %v3094_v55 = vadd.f32 %v5145_v43, %v3059_v34  ;;  %v3057_v38 = vadd.f32 %v2970_v6, %v2804_v24  ;;  %v3866_v63 = vpop.f32.mrf.mxu1  ;;  %v5380_v34 = vld [vmem:[#allocation6_spill] sm:$0xff] }
 0x1c2   : > { %v3892_v56 = vpop.f32.mrf.mxu0  ;;  %v2811_v2 = vadd.f32 %v3866_v63, %v2373_v3  ;;  %v2057_v37 = vadd.f32 %v5381_v35, %v5380_v34  ;;  %v2377_v6 = vadd.f32 %v5382_v21, %v2059_v29 }
 0x1c3   : > { %3145 = vst [vmem:[%s5161_s9 + $0x28] sm:$0xff] %v3117_v45  ;;  %v3122_v9 = vmax.f32 %v3094_v55, 0.0  ;;  %v3092_v31 = vadd.f32 %v5145_v43, %v3057_v38  ;;  %v3060_v52 = vadd.f32 %v3892_v56, %v2807_v57  ;;  %v2736_v14 = vpop.f32.mrf.mxu1  ;;  %v5384_v56 = vld [vmem:[#allocation19_spill] sm:$0xff] }
 0x1c4   : > { %v2973_v30 = vpop.f32.mrf.mxu0  ;;  %v2809_v49 = vadd.f32 %v2736_v14, %v2371_v59  ;;  %v5390_v59 = vld [vmem:[#allocation23_spill] sm:$0xff] }
 0x1c5   : > { %3150 = vst [vmem:[%s5161_s9 + $0x50] sm:$0xff] %v3122_v9  ;;  %v3120_v25 = vmax.f32 %v3092_v31, 0.0  ;;  %v3095_v51 = vadd.f32 %v5145_v43, %v3060_v52  ;;  %v3058_v50 = vadd.f32 %v2973_v30, %v2805_v28  ;;  %v3869_v41 = vpop.f32.mrf.mxu1  ;;  %v2062_v28 = vadd.f32 %v5384_v56, %v5383_v20  ;;  %v5385_v9 = vld [vmem:[#allocation24_spill] sm:$0xff] }
 0x1c6   : > { %v3895_v42 = vpop.f32.mrf.mxu0  ;;  %v2814_v24 = vadd.f32 %v3869_v41, %v2376_v8  ;;  %v2375_v31 = vadd.f32 %v5385_v9, %v2057_v37  ;;  %v2063_v41 = vadd.f32 %v5390_v59, %v5389_v7  ;;  %v5392_v8 = vld [vmem:[#allocation10_spill] sm:$0xff] }
 0x1c7   : > { %3148 = vst [vmem:[%s5161_s9 + $0x40] sm:$0xff] %v3120_v25  ;;  %v3123_v32 = vmax.f32 %v3095_v51, 0.0  ;;  %v3093_v46 = vadd.f32 %v5145_v43, %v3058_v50  ;;  %v3063_v53 = vadd.f32 %v3895_v42, %v2810_v26  ;;  %v2749_v23 = vpop.f32.mrf.mxu1  ;;  %v5386_v25 = vld [vmem:[#allocation8_spill] sm:$0xff]  ;;  %v5387_v51 = vld [vmem:[#allocation21_spill] sm:$0xff]  ;;  %v2380_v3 = vadd.f32 %v5388_v27, %v2062_v28 }
 0x1c8   : > { %v2986_v36 = vpop.f32.mrf.mxu0  ;;  %v2812_v55 = vadd.f32 %v2749_v23, %v2374_v15  ;;  %v2060_v50 = vadd.f32 %v5387_v51, %v5386_v25  ;;  %v5393_v23 = vld [vmem:[#allocation25_spill] sm:$0xff]  ;;  %v5395_v15 = vld [vmem:[#allocation11_spill] sm:$0xff] }
 0x1c9   : > { %3151 = vst [vmem:[%s5161_s9 + $0x58] sm:$0xff] %v3123_v32  ;;  %v3121_v54 = vmax.f32 %v3093_v46, 0.0  ;;  %v3098_v12 = vadd.f32 %v5145_v43, %v3063_v53  ;;  %v3061_v1 = vadd.f32 %v2986_v36, %v2808_v33  ;;  %v3870_v58 = vpop.f32.mrf.mxu1  ;;  %v5391_v36 = vld [vmem:[#allocation28_spill] sm:$0xff] }
 0x1ca   : > { %v3896_v62 = vpop.f32.mrf.mxu0  ;;  %v2815_v44 = vadd.f32 %v3870_v58, %v2377_v6  ;;  %v5396_v58 = vld [vmem:[#allocation27_spill] sm:$0xff]  ;;  %v5398_v6 = vld [vmem:[#allocation12_spill] sm:$0xff] }
 0x1cb   : > { %3149 = vst [vmem:[%s5161_s9 + $0x48] sm:$0xff] %v3121_v54  ;;  %v3126_v39 = vmax.f32 %v3098_v12, 0.0  ;;  %v3096_v0 = vadd.f32 %v5145_v43, %v3061_v1  ;;  %v3064_v16 = vadd.f32 %v3896_v62, %v2811_v2  ;;  %v2752_v57 = vpop.f32.mrf.mxu1  ;;  %v2378_v2 = vadd.f32 %v5391_v36, %v2060_v50 }
 0x1cc   : > { %v2989_v17 = vpop.f32.mrf.mxu0  ;;  %v2813_v33 = vadd.f32 %v2752_v57, %v2375_v31  ;;  %v2061_v62 = vadd.f32 %v5393_v23, %v5392_v8  ;;  %v5399_v57 = vld [vmem:[#allocation29_spill] sm:$0xff] }
 0x1cd   : > { %3154 = vst [vmem:[%s5161_s9 + $0x70] sm:$0xff] %v3126_v39  ;;  %v3124_v61 = vmax.f32 %v3096_v0, 0.0  ;;  %v3099_v18 = vadd.f32 %v5145_v43, %v3064_v16  ;;  %v3062_v13 = vadd.f32 %v2989_v17, %v2809_v49  ;;  %v3873_v52 = vpop.f32.mrf.mxu1  ;;  %v5394_v49 = vld [vmem:[#allocation30_spill] sm:$0xff]  ;;  %v2066_v17 = vadd.f32 %v5396_v58, %v5395_v15  ;;  %v5401_v31 = vld [vmem:[#allocation13_spill] sm:$0xff] }
 0x1ce   : > { %v3899_v45 = vpop.f32.mrf.mxu0  ;;  %v2818_v1 = vadd.f32 %v3873_v52, %v2380_v3  ;;  %v2381_v39 = vadd.f32 %v5394_v49, %v2063_v41  ;;  %v5402_v52 = vld [vmem:[#allocation31_spill] sm:$0xff]  ;;  %v5404_v3 = vld [vmem:[#allocation14_spill] sm:$0xff]  ;;  %v5406_v41 = vld [vmem:[#allocation36_spill] sm:$0xff] }
 0x1cf   : > { %3152 = vst [vmem:[%s5161_s9 + $0x60] sm:$0xff] %v3124_v61  ;;  %v3127_v38 = vmax.f32 %v3099_v18, 0.0  ;;  %v3097_v4 = vadd.f32 %v5145_v43, %v3062_v13  ;;  %v3067_v60 = vadd.f32 %v3899_v45, %v2814_v24  ;;  %v2765_v14 = vpop.f32.mrf.mxu1  ;;  %v5397_v24 = vld [vmem:[#allocation32_spill] sm:$0xff]  ;;  %v2064_v45 = vadd.f32 %v5399_v57, %v5398_v6 }
 0x1d0   : > { %v3002_v19 = vpop.f32.mrf.mxu0  ;;  %v2816_v11 = vadd.f32 %v2765_v14, %v2378_v2  ;;  %v2379_v61 = vadd.f32 %v5397_v24, %v2061_v62  ;;  %v5405_v14 = vld [vmem:[#allocation33_spill] sm:$0xff] }
 0x1d1   : > { %3155 = vst [vmem:[%s5161_s9 + $0x78] sm:$0xff] %v3127_v38  ;;  %v3125_v63 = vmax.f32 %v3097_v4, 0.0  ;;  %v3102_v30 = vadd.f32 %v5145_v43, %v3067_v60  ;;  %v3065_v26 = vadd.f32 %v3002_v19, %v2812_v55  ;;  %v3874_v54 = vpop.f32.mrf.mxu1  ;;  %v5400_v55 = vld [vmem:[#allocation34_spill] sm:$0xff]  ;;  %v2067_v19 = vadd.f32 %v5402_v52, %v5401_v31 }
 0x1d2   : > { %v3900_v42 = vpop.f32.mrf.mxu0  ;;  %v2819_v34 = vadd.f32 %v3874_v54, %v2381_v39  ;;  %v2384_v38 = vadd.f32 %v5400_v55, %v2066_v17 }
 0x1d3   : > { %3153 = vst [vmem:[%s5161_s9 + $0x68] sm:$0xff] %v3125_v63  ;;  %v3130_v32 = vmax.f32 %v3102_v30, 0.0  ;;  %v3100_v46 = vadd.f32 %v5145_v43, %v3065_v26  ;;  %v3068_v53 = vadd.f32 %v3900_v42, %v2815_v44  ;;  %v2768_v0 = vpop.f32.mrf.mxu1  ;;  %v5403_v44 = vld [vmem:[#allocation35_spill] sm:$0xff]  ;;  %v2065_v42 = vadd.f32 %v5405_v14, %v5404_v3 }
 0x1d4   : > { %v3005_v12 = vpop.f32.mrf.mxu0  ;;  %v2817_v20 = vadd.f32 %v2768_v0, %v2379_v61  ;;  %v2382_v63 = vadd.f32 %v5403_v44, %v2064_v45 }
 0x1d5   : > { %3158 = vst [vmem:[%s5161_s9 + $0x90] sm:$0xff] %v3130_v32  ;;  %v3128_v47 = vmax.f32 %v3100_v46, 0.0  ;;  %v3103_v10 = vadd.f32 %v5145_v43, %v3068_v53  ;;  %v3066_v48 = vadd.f32 %v3005_v12, %v2813_v33  ;;  %v3877_v18 = vpop.f32.mrf.mxu1  ;;  %v2385_v33 = vadd.f32 %v5132_v22, %v2067_v19 }
 0x1d6   : > { %v3903_v16 = vpop.f32.mrf.mxu0  ;;  %v2822_v25 = vadd.f32 %v3877_v18, %v2384_v38  ;;  %v2383_v36 = vadd.f32 %v5406_v41, %v2065_v42 }
 0x1d7   : > { %3156 = vst [vmem:[%s5161_s9 + $0x80] sm:$0xff] %v3128_v47  ;;  %v3131_v40 = vmax.f32 %v3103_v10, 0.0  ;;  %v3101_v29 = vadd.f32 %v5145_v43, %v3066_v48  ;;  %v3071_v5 = vadd.f32 %v3903_v16, %v2818_v1  ;;  %v2781_v4 = vpop.f32.mrf.mxu1 }
 0x1d8   : > { %v3018_v13 = vpop.f32.mrf.mxu0  ;;  %v2820_v46 = vadd.f32 %v2781_v4, %v2382_v63 }
 0x1d9   : > { %3159 = vst [vmem:[%s5161_s9 + $0x98] sm:$0xff] %v3131_v40  ;;  %v3129_v35 = vmax.f32 %v3101_v29, 0.0  ;;  %v3106_v37 = vadd.f32 %v5145_v43, %v3071_v5  ;;  %v3069_v21 = vadd.f32 %v3018_v13, %v2816_v11  ;;  %v3878_v30 = vpop.f32.mrf.mxu1 }
 0x1da   : > { %v3904_v60 = vpop.f32.mrf.mxu0  ;;  %v2823_v12 = vadd.f32 %v3878_v30, %v2385_v33 }
 0x1db   : > { %3157 = vst [vmem:[%s5161_s9 + $0x88] sm:$0xff] %v3129_v35  ;;  %v3134_v56 = vmax.f32 %v3106_v37, 0.0  ;;  %v3104_v28 = vadd.f32 %v5145_v43, %v3069_v21  ;;  %v3072_v9 = vadd.f32 %v3904_v60, %v2819_v34  ;;  %v2784_v2 = vpop.f32.mrf.mxu1 }
 0x1dc   : > { %v3021_v26 = vpop.f32.mrf.mxu0  ;;  %v2821_v48 = vadd.f32 %v2784_v2, %v2383_v36 }
 0x1dd   : > { %3162 = vst [vmem:[%s5161_s9 + $0xb0] sm:$0xff] %v3134_v56  ;;  %v3132_v51 = vmax.f32 %v3104_v28, 0.0  ;;  %v3107_v50 = vadd.f32 %v5145_v43, %v3072_v9  ;;  %v3070_v27 = vadd.f32 %v3021_v26, %v2817_v20 }
 0x1de   : > { %v3907_v32 = vpop.f32.mrf.mxu0 }
 0x1df   : > { %3160 = vst [vmem:[%s5161_s9 + $0xa0] sm:$0xff] %v3132_v51  ;;  %v3135_v53 = vmax.f32 %v3107_v50, 0.0  ;;  %v3105_v7 = vadd.f32 %v5145_v43, %v3070_v27  ;;  %v3075_v59 = vadd.f32 %v3907_v32, %v2822_v25 }
 0x1e0   : > { %v3034_v54 = vpop.f32.mrf.mxu0 }
 0x1e1   : > { %3163 = vst [vmem:[%s5161_s9 + $0xb8] sm:$0xff] %v3135_v53  ;;  %v3133_v1 = vmax.f32 %v3105_v7, 0.0  ;;  %v3110_v22 = vadd.f32 %v5145_v43, %v3075_v59  ;;  %v3073_v47 = vadd.f32 %v3034_v54, %v2820_v46 }
 0x1e2   : > { %v3908_v10 = vpop.f32.mrf.mxu0 }
 0x1e3   : > { %3161 = vst [vmem:[%s5161_s9 + $0xa8] sm:$0xff] %v3133_v1  ;;  %v3138_v8 = vmax.f32 %v3110_v22, 0.0  ;;  %v3108_v23 = vadd.f32 %v5145_v43, %v3073_v47  ;;  %v3076_v62 = vadd.f32 %v3908_v10, %v2823_v12 }
 0x1e4   : > { %v3037_v49 = vpop.f32.mrf.mxu0 }
 0x1e5   : > { %3166 = vst [vmem:[%s5161_s9 + $0xd0] sm:$0xff] %v3138_v8  ;;  %v3136_v39 = vmax.f32 %v3108_v23, 0.0  ;;  %v3111_v0 = vadd.f32 %v5145_v43, %v3076_v62  ;;  %v3074_v16 = vadd.f32 %v3037_v49, %v2821_v48 }
 0x1e7   : > { %3164 = vst [vmem:[%s5161_s9 + $0xc0] sm:$0xff] %v3136_v39  ;;  %v3139_v11 = vmax.f32 %v3111_v0, 0.0  ;;  %v3109_v40 = vadd.f32 %v5145_v43, %v3074_v16 }
 0x1e9   : > { %3167 = vst [vmem:[%s5161_s9 + $0xd8] sm:$0xff] %v3139_v11  ;;  %v3137_v29 = vmax.f32 %v3109_v40, 0.0 }
 0x1eb   : > { %3165 = vst [vmem:[%s5161_s9 + $0xc8] sm:$0xff] %v3137_v29 }
 0x1ec   : > { %4070 = shalt.err (!%p4067_p5)
}
 0x1ed   : > { %s4071_s29 = scalar_lea.hbm %s5287_s21, 3584  ;;  %s4075_s5 = scalar_lea.hbm %s5340_s3, 7168 }
 0x1ee   : > { %p4072_p6 = scmp.ne.s32.totalorder %s5287_s21, %s4071_s29  ;;  %p4076_p10 = scmp.lt.s32.totalorder %s5287_s21, %s5340_s3 }
 0x1ef   : > { %p4077_p11 = scmp.lt.s32.totalorder %s4075_s5, %s4071_s29 }
 0x1f0   : > { %p4073_p7 = pnand %p4072_p6, %p4198_p4 }
 0x1f1   : > { %p4078_p12 = por %p4077_p11, %p4076_p10 }
 0x1f2   : > { %p4074_p9 = pneg %p4073_p7 }
 0x1f4   : > { %p4079_p13 = pnand %p4078_p12, %p4074_p9 }
 0x1f6   : > { %4082 = shalt.err (!%p4079_p13)
}
 0x1f7   : > { %s4136_s8 = smov 128   ;;  %s4137_s9 = smov 8  }
 0x1f8   : > { %3924 = dma.vmem_to_hbm [thread:$0]  (%p4198_p4), %s5281_s11, 3584, %s5287_s21, %s5292_s15, %s4136_s8, %s4136_s8, %s4137_s9  }
 0x1f9 PF: > { %p3930_p0 = scmp.ge.s32.totalorder %s4133_s17, 2  ;;  %s3198_s10 = sand.u32 1, %s4113_s12  }
 0x1fa   : > { %s3199_s18 = scalar_lea.sflag [#allocation3], %s3198_s10 }
 0x1fb   : > { %p3927_p1 = pnand %p3930_p0, %p4205_p8 }
 0x1fd   : > { %p3928_p2 = pneg %p3927_p1 }
 0x1ff   : > { %4108 = dma.done.wait (%p3928_p2), %s3199_s18, 3584  }
 0x200   : > { %4110 = vsyncadd (%p3928_p2), %s3199_s18, 4294963712  ;;  %s16_s17 = sadd.s32 1, %s4133_s17   ;;  %s5407_s12 = smov %s4117_s13 }
 0x201   : > { %p13_p3 = scmp.ge.s32.totalorder %s16_s17, 4   ;;  %s5408_s13 = smov %s4121_s14 }
 0x202   : > { %s5409_s14 = smov %s4211_s25  ;;  %s5410_s15 = smov %s4129_s16 }
 0x203   : > { %s5411_s16 = smov %s5413_s20  ;;  %15 = sbr.rel (!%p13_p3) target bundleno = 4 (0x4), region = 81 }
 0x208   :  { %3204 = vsyncpa [#allocation3], 1 }
 0x209   :  { %3206 = vsyncpa [#allocation3 + $0x1], 1 }

</bundles_post_ra>
